<compile_context>
chip_gen: v7x
topology: tpu7x:2x2x1
jax: 0.10.0
libtpu: 0.0.40
codegen_flags: <defaults>
</compile_context>

<pallas_src>
import jax
import jax.numpy as jnp
from jax.experimental import pallas as pl
from jax.experimental.pallas import tpu as pltpu


# Column layout of the packed parameter slab (rows padded to 32):
#   layer1 [W1|b1] -> cols [ 0,  3)   (uses rows 0..15)
#   layer2 [W2|b2] -> cols [ 3, 20)   (uses rows 0..31)
#   layer3 [W3|b3] -> cols [20, 53)   (uses rows 0..1)
_SLAB_ROWS = 32
_L1_OFF, _L2_OFF, _L3_OFF = 0, 3, 20
_SLAB_COLS = 53


def _linear_T(wb_ref, out_rows, col_off, hT, *, relu):
    """y = W @ hT + b via unrolled VPU broadcast-FMAs (no MXU).

    wb_ref:  packed (32, 53) parameter slab in VMEM.
    out_rows: number of output features O for this layer.
    col_off:  first column of this layer's [W | b] block inside the slab.
    hT:       (K, TB) feature-major activations (batch on lanes).
    returns   (O, TB) float32.
    """
    K = hT.shape[0]

    def w_col(k):  # static slice -> single column load, lane-broadcast later
        return wb_ref[0:out_rows, col_off + k:col_off + k + 1]

    # Fold the bias column (at col_off + K) into the first FMA.
    acc = w_col(0) * hT[0:1, :] + w_col(K)
    for k in range(1, K):
        acc = acc + w_col(k) * hT[k:k + 1, :]
    if relu:
        acc = jnp.maximum(acc, 0.0)
    return acc


def _mlp_kernel(xT_ref, wb_ref, oT_ref):
    xT = xT_ref[...].astype(jnp.float32)                    # (2,  TB)
    h1 = _linear_T(wb_ref, 16, _L1_OFF, xT, relu=True)      # (16, TB)
    h2 = _linear_T(wb_ref, 32, _L2_OFF, h1, relu=True)      # (32, TB)
    out = _linear_T(wb_ref, 2, _L3_OFF, h2, relu=False)     # (2,  TB)
    oT_ref[...] = out.astype(oT_ref.dtype)


def pack_params(params):
    """Pack all layers' (W, b) into one (32, 53) f32 slab: [W1|b1 W2|b2 W3|b3],
    each layer's rows zero-padded to 32."""
    def pad_pack(w, b):
        wb = jnp.concatenate([w, b[:, None]], axis=1)
        return jnp.pad(wb, ((0, _SLAB_ROWS - wb.shape[0]), (0, 0)))
    slab = jnp.concatenate(
        [pad_pack(params["w1"], params["b1"]),    # (32, 3)
         pad_pack(params["w2"], params["b2"]),    # (32, 17)
         pad_pack(params["w3"], params["b3"])],   # (32, 33)
        axis=1).astype(jnp.float32)               # (32, 53)
    assert slab.shape == (_SLAB_ROWS, _SLAB_COLS)
    return slab


def generator_forward(x, params, *, batch_tile=512):
    """x: (B, 2) float32 (PyTorch nn.Linear convention). Returns (B, 2)."""
    B, f_in = x.shape
    assert f_in == 2
    assert batch_tile % 128 == 0

    wb = pack_params(params)

    # Layout plumbing in the wrapper: batch goes on the lane axis, padded to
    # a multiple of 128 so every load/store in the kernel is full-width.
    b_pad = max(128, pl.cdiv(B, 128) * 128)
    tb = min(batch_tile, b_pad)
    b_pad = pl.cdiv(b_pad, tb) * tb

    xT = jnp.pad(x.T, ((0, 0), (0, b_pad - B)))             # (2, b_pad)

    grid = (b_pad // tb,)

    oT = pl.pallas_call(
        _mlp_kernel,
        out_shape=jax.ShapeDtypeStruct((2, b_pad), x.dtype),
        grid=grid,
        in_specs=[
            pl.BlockSpec((2, tb), lambda i: (0, i)),         # xT batch tile
            pl.BlockSpec(wb.shape, lambda i: (0, 0)),        # resident params
        ],
        out_specs=pl.BlockSpec((2, tb), lambda i: (0, i)),
        compiler_params=pltpu.CompilerParams(
            dimension_semantics=("parallel",)),
    )(xT, wb)

    return oT[:, :B].T                                       # back to (B, 2)


def init_params(key):
    """PyTorch default Linear init: U(-1/sqrt(fan_in), 1/sqrt(fan_in)),
    weights stored in PyTorch (out_features, in_features) layout."""
    dims = [(2, 16), (16, 32), (32, 2)]
    params = {}
    keys = jax.random.split(key, 2 * len(dims))
    for idx, (fan_in, fan_out) in enumerate(dims):
        bound = 1.0 / (fan_in ** 0.5)
        wk, bk = keys[2 * idx], keys[2 * idx + 1]
        params[f"w{idx + 1}"] = jax.random.uniform(
            wk, (fan_out, fan_in), jnp.float32, minval=-bound, maxval=bound)
        params[f"b{idx + 1}"] = jax.random.uniform(
            bk, (fan_out,), jnp.float32, minval=-bound, maxval=bound)
    return params


def _reference_forward(x, params):
    h1 = jnp.maximum(x @ params["w1"].T + params["b1"], 0.0)
    h2 = jnp.maximum(h1 @ params["w2"].T + params["b2"], 0.0)
    return h2 @ params["w3"].T + params["b3"]


if __name__ == "__main__":
    key = jax.random.PRNGKey(0)
    pkey, xkey = jax.random.split(key)
    params = init_params(pkey)

    # Lane-dense demo batch (multiple of 128 -> no padding, single grid step).
    B = 256
    x = jax.random.normal(xkey, (B, 2), jnp.float32)
    out = jax.block_until_ready(generator_forward(x, params))
    ref = _reference_forward(x, params)
    assert out.shape == (B, 2)
    assert jnp.allclose(out, ref, atol=1e-5, rtol=1e-5), "mismatch vs JAX reference"

    # Padded path (batch not a multiple of 128).
    x_small = jax.random.normal(xkey, (16, 2), jnp.float32)
    out_small = jax.block_until_ready(generator_forward(x_small, params))
    assert jnp.allclose(out_small, _reference_forward(x_small, params),
                        atol=1e-5, rtol=1e-5), "mismatch vs JAX reference (padded)"

    # Multi-tile path (batch larger than one 512-lane tile).
    x_big = jax.random.normal(xkey, (600, 2), jnp.float32)
    out_big = jax.block_until_ready(generator_forward(x_big, params))
    assert jnp.allclose(out_big, _reference_forward(x_big, params),
                        atol=1e-5, rtol=1e-5), "mismatch vs JAX reference (multi-tile)"

    print("KERNEL_OK")
</pallas_src>

<mosaic_0001>
module attributes {stable_mosaic.version = 11 : i64} {
  func.func @_mlp_kernel(%arg0: i32, %arg1: memref<2x256xf32, #tpu.memory_space<vmem>>, %arg2: memref<32x53xf32, #tpu.memory_space<vmem>>, %arg3: memref<2x256xf32, #tpu.memory_space<vmem>>) attributes {dimension_semantics = [#tpu.dimension_semantics<parallel>], iteration_bounds = array<i64: 1>, scalar_prefetch = 0 : i64, scratch_operands = 0 : i64, tpu.core_type = #tpu.core_type<tc>, window_params = [{transform_indices = @transform_0, window_bounds = array<i64: 2, 256>}, {pipeline_mode = #tpu.pipeline_mode<synchronous>, transform_indices = @transform_1, window_bounds = array<i64: 32, 53>}, {transform_indices = @transform_2, window_bounds = array<i64: 2, 256>}]} {
    %c0 = arith.constant 0 : index
    %c0_0 = arith.constant 0 : index
    %0 = vector.load %arg1[%c0, %c0_0] : memref<2x256xf32, #tpu.memory_space<vmem>>, vector<2x256xf32>
    %c0_1 = arith.constant 0 : index
    %c0_2 = arith.constant 0 : index
    %1 = vector.load %arg2[%c0_1, %c0_2] : memref<32x53xf32, #tpu.memory_space<vmem>>, vector<16x1xf32>
    %2 = vector.extract_strided_slice %0 {offsets = [0, 0], sizes = [1, 256], strides = [1, 1]} : vector<2x256xf32> to vector<1x256xf32>
    %3 = vector.broadcast %1 : vector<16x1xf32> to vector<16x256xf32>
    %4 = vector.broadcast %2 : vector<1x256xf32> to vector<16x256xf32>
    %5 = arith.mulf %3, %4 : vector<16x256xf32>
    %c0_3 = arith.constant 0 : index
    %c2 = arith.constant 2 : index
    %6 = vector.load %arg2[%c0_3, %c2] : memref<32x53xf32, #tpu.memory_space<vmem>>, vector<16x1xf32>
    %7 = vector.broadcast %6 : vector<16x1xf32> to vector<16x256xf32>
    %8 = arith.addf %5, %7 : vector<16x256xf32>
    %c0_4 = arith.constant 0 : index
    %c1 = arith.constant 1 : index
    %9 = vector.load %arg2[%c0_4, %c1] : memref<32x53xf32, #tpu.memory_space<vmem>>, vector<16x1xf32>
    %10 = vector.extract_strided_slice %0 {offsets = [1, 0], sizes = [1, 256], strides = [1, 1]} : vector<2x256xf32> to vector<1x256xf32>
    %11 = vector.broadcast %9 : vector<16x1xf32> to vector<16x256xf32>
    %12 = vector.broadcast %10 : vector<1x256xf32> to vector<16x256xf32>
    %13 = arith.mulf %11, %12 : vector<16x256xf32>
    %14 = arith.addf %8, %13 : vector<16x256xf32>
    %cst = arith.constant 0.000000e+00 : f32
    %15 = vector.broadcast %cst : f32 to vector<16x256xf32>
    %16 = arith.maximumf %14, %15 : vector<16x256xf32>
    %c0_5 = arith.constant 0 : index
    %c3 = arith.constant 3 : index
    %17 = vector.load %arg2[%c0_5, %c3] : memref<32x53xf32, #tpu.memory_space<vmem>>, vector<32x1xf32>
    %18 = vector.extract_strided_slice %16 {offsets = [0, 0], sizes = [1, 256], strides = [1, 1]} : vector<16x256xf32> to vector<1x256xf32>
    %19 = vector.broadcast %17 : vector<32x1xf32> to vector<32x256xf32>
    %20 = vector.broadcast %18 : vector<1x256xf32> to vector<32x256xf32>
    %21 = arith.mulf %19, %20 : vector<32x256xf32>
    %c0_6 = arith.constant 0 : index
    %c19 = arith.constant 19 : index
    %22 = vector.load %arg2[%c0_6, %c19] : memref<32x53xf32, #tpu.memory_space<vmem>>, vector<32x1xf32>
    %23 = vector.broadcast %22 : vector<32x1xf32> to vector<32x256xf32>
    %24 = arith.addf %21, %23 : vector<32x256xf32>
    %c0_7 = arith.constant 0 : index
    %c4 = arith.constant 4 : index
    %25 = vector.load %arg2[%c0_7, %c4] : memref<32x53xf32, #tpu.memory_space<vmem>>, vector<32x1xf32>
    %26 = vector.extract_strided_slice %16 {offsets = [1, 0], sizes = [1, 256], strides = [1, 1]} : vector<16x256xf32> to vector<1x256xf32>
    %27 = vector.broadcast %25 : vector<32x1xf32> to vector<32x256xf32>
    %28 = vector.broadcast %26 : vector<1x256xf32> to vector<32x256xf32>
    %29 = arith.mulf %27, %28 : vector<32x256xf32>
    %30 = arith.addf %24, %29 : vector<32x256xf32>
    %c0_8 = arith.constant 0 : index
    %c5 = arith.constant 5 : index
    %31 = vector.load %arg2[%c0_8, %c5] : memref<32x53xf32, #tpu.memory_space<vmem>>, vector<32x1xf32>
    %32 = vector.extract_strided_slice %16 {offsets = [2, 0], sizes = [1, 256], strides = [1, 1]} : vector<16x256xf32> to vector<1x256xf32>
    %33 = vector.broadcast %31 : vector<32x1xf32> to vector<32x256xf32>
    %34 = vector.broadcast %32 : vector<1x256xf32> to vector<32x256xf32>
    %35 = arith.mulf %33, %34 : vector<32x256xf32>
    %36 = arith.addf %30, %35 : vector<32x256xf32>
    %c0_9 = arith.constant 0 : index
    %c6 = arith.constant 6 : index
    %37 = vector.load %arg2[%c0_9, %c6] : memref<32x53xf32, #tpu.memory_space<vmem>>, vector<32x1xf32>
    %38 = vector.extract_strided_slice %16 {offsets = [3, 0], sizes = [1, 256], strides = [1, 1]} : vector<16x256xf32> to vector<1x256xf32>
    %39 = vector.broadcast %37 : vector<32x1xf32> to vector<32x256xf32>
    %40 = vector.broadcast %38 : vector<1x256xf32> to vector<32x256xf32>
    %41 = arith.mulf %39, %40 : vector<32x256xf32>
    %42 = arith.addf %36, %41 : vector<32x256xf32>
    %c0_10 = arith.constant 0 : index
    %c7 = arith.constant 7 : index
    %43 = vector.load %arg2[%c0_10, %c7] : memref<32x53xf32, #tpu.memory_space<vmem>>, vector<32x1xf32>
    %44 = vector.extract_strided_slice %16 {offsets = [4, 0], sizes = [1, 256], strides = [1, 1]} : vector<16x256xf32> to vector<1x256xf32>
    %45 = vector.broadcast %43 : vector<32x1xf32> to vector<32x256xf32>
    %46 = vector.broadcast %44 : vector<1x256xf32> to vector<32x256xf32>
    %47 = arith.mulf %45, %46 : vector<32x256xf32>
    %48 = arith.addf %42, %47 : vector<32x256xf32>
    %c0_11 = arith.constant 0 : index
    %c8 = arith.constant 8 : index
    %49 = vector.load %arg2[%c0_11, %c8] : memref<32x53xf32, #tpu.memory_space<vmem>>, vector<32x1xf32>
    %50 = vector.extract_strided_slice %16 {offsets = [5, 0], sizes = [1, 256], strides = [1, 1]} : vector<16x256xf32> to vector<1x256xf32>
    %51 = vector.broadcast %49 : vector<32x1xf32> to vector<32x256xf32>
    %52 = vector.broadcast %50 : vector<1x256xf32> to vector<32x256xf32>
    %53 = arith.mulf %51, %52 : vector<32x256xf32>
    %54 = arith.addf %48, %53 : vector<32x256xf32>
    %c0_12 = arith.constant 0 : index
    %c9 = arith.constant 9 : index
    %55 = vector.load %arg2[%c0_12, %c9] : memref<32x53xf32, #tpu.memory_space<vmem>>, vector<32x1xf32>
    %56 = vector.extract_strided_slice %16 {offsets = [6, 0], sizes = [1, 256], strides = [1, 1]} : vector<16x256xf32> to vector<1x256xf32>
    %57 = vector.broadcast %55 : vector<32x1xf32> to vector<32x256xf32>
    %58 = vector.broadcast %56 : vector<1x256xf32> to vector<32x256xf32>
    %59 = arith.mulf %57, %58 : vector<32x256xf32>
    %60 = arith.addf %54, %59 : vector<32x256xf32>
    %c0_13 = arith.constant 0 : index
    %c10 = arith.constant 10 : index
    %61 = vector.load %arg2[%c0_13, %c10] : memref<32x53xf32, #tpu.memory_space<vmem>>, vector<32x1xf32>
    %62 = vector.extract_strided_slice %16 {offsets = [7, 0], sizes = [1, 256], strides = [1, 1]} : vector<16x256xf32> to vector<1x256xf32>
    %63 = vector.broadcast %61 : vector<32x1xf32> to vector<32x256xf32>
    %64 = vector.broadcast %62 : vector<1x256xf32> to vector<32x256xf32>
    %65 = arith.mulf %63, %64 : vector<32x256xf32>
    %66 = arith.addf %60, %65 : vector<32x256xf32>
    %c0_14 = arith.constant 0 : index
    %c11 = arith.constant 11 : index
    %67 = vector.load %arg2[%c0_14, %c11] : memref<32x53xf32, #tpu.memory_space<vmem>>, vector<32x1xf32>
    %68 = vector.extract_strided_slice %16 {offsets = [8, 0], sizes = [1, 256], strides = [1, 1]} : vector<16x256xf32> to vector<1x256xf32>
    %69 = vector.broadcast %67 : vector<32x1xf32> to vector<32x256xf32>
    %70 = vector.broadcast %68 : vector<1x256xf32> to vector<32x256xf32>
    %71 = arith.mulf %69, %70 : vector<32x256xf32>
    %72 = arith.addf %66, %71 : vector<32x256xf32>
    %c0_15 = arith.constant 0 : index
    %c12 = arith.constant 12 : index
    %73 = vector.load %arg2[%c0_15, %c12] : memref<32x53xf32, #tpu.memory_space<vmem>>, vector<32x1xf32>
    %74 = vector.extract_strided_slice %16 {offsets = [9, 0], sizes = [1, 256], strides = [1, 1]} : vector<16x256xf32> to vector<1x256xf32>
    %75 = vector.broadcast %73 : vector<32x1xf32> to vector<32x256xf32>
    %76 = vector.broadcast %74 : vector<1x256xf32> to vector<32x256xf32>
    %77 = arith.mulf %75, %76 : vector<32x256xf32>
    %78 = arith.addf %72, %77 : vector<32x256xf32>
    %c0_16 = arith.constant 0 : index
    %c13 = arith.constant 13 : index
    %79 = vector.load %arg2[%c0_16, %c13] : memref<32x53xf32, #tpu.memory_space<vmem>>, vector<32x1xf32>
    %80 = vector.extract_strided_slice %16 {offsets = [10, 0], sizes = [1, 256], strides = [1, 1]} : vector<16x256xf32> to vector<1x256xf32>
    %81 = vector.broadcast %79 : vector<32x1xf32> to vector<32x256xf32>
    %82 = vector.broadcast %80 : vector<1x256xf32> to vector<32x256xf32>
    %83 = arith.mulf %81, %82 : vector<32x256xf32>
    %84 = arith.addf %78, %83 : vector<32x256xf32>
    %c0_17 = arith.constant 0 : index
    %c14 = arith.constant 14 : index
    %85 = vector.load %arg2[%c0_17, %c14] : memref<32x53xf32, #tpu.memory_space<vmem>>, vector<32x1xf32>
    %86 = vector.extract_strided_slice %16 {offsets = [11, 0], sizes = [1, 256], strides = [1, 1]} : vector<16x256xf32> to vector<1x256xf32>
    %87 = vector.broadcast %85 : vector<32x1xf32> to vector<32x256xf32>
    %88 = vector.broadcast %86 : vector<1x256xf32> to vector<32x256xf32>
    %89 = arith.mulf %87, %88 : vector<32x256xf32>
    %90 = arith.addf %84, %89 : vector<32x256xf32>
    %c0_18 = arith.constant 0 : index
    %c15 = arith.constant 15 : index
    %91 = vector.load %arg2[%c0_18, %c15] : memref<32x53xf32, #tpu.memory_space<vmem>>, vector<32x1xf32>
    %92 = vector.extract_strided_slice %16 {offsets = [12, 0], sizes = [1, 256], strides = [1, 1]} : vector<16x256xf32> to vector<1x256xf32>
    %93 = vector.broadcast %91 : vector<32x1xf32> to vector<32x256xf32>
    %94 = vector.broadcast %92 : vector<1x256xf32> to vector<32x256xf32>
    %95 = arith.mulf %93, %94 : vector<32x256xf32>
    %96 = arith.addf %90, %95 : vector<32x256xf32>
    %c0_19 = arith.constant 0 : index
    %c16 = arith.constant 16 : index
    %97 = vector.load %arg2[%c0_19, %c16] : memref<32x53xf32, #tpu.memory_space<vmem>>, vector<32x1xf32>
    %98 = vector.extract_strided_slice %16 {offsets = [13, 0], sizes = [1, 256], strides = [1, 1]} : vector<16x256xf32> to vector<1x256xf32>
    %99 = vector.broadcast %97 : vector<32x1xf32> to vector<32x256xf32>
    %100 = vector.broadcast %98 : vector<1x256xf32> to vector<32x256xf32>
    %101 = arith.mulf %99, %100 : vector<32x256xf32>
    %102 = arith.addf %96, %101 : vector<32x256xf32>
    %c0_20 = arith.constant 0 : index
    %c17 = arith.constant 17 : index
    %103 = vector.load %arg2[%c0_20, %c17] : memref<32x53xf32, #tpu.memory_space<vmem>>, vector<32x1xf32>
    %104 = vector.extract_strided_slice %16 {offsets = [14, 0], sizes = [1, 256], strides = [1, 1]} : vector<16x256xf32> to vector<1x256xf32>
    %105 = vector.broadcast %103 : vector<32x1xf32> to vector<32x256xf32>
    %106 = vector.broadcast %104 : vector<1x256xf32> to vector<32x256xf32>
    %107 = arith.mulf %105, %106 : vector<32x256xf32>
    %108 = arith.addf %102, %107 : vector<32x256xf32>
    %c0_21 = arith.constant 0 : index
    %c18 = arith.constant 18 : index
    %109 = vector.load %arg2[%c0_21, %c18] : memref<32x53xf32, #tpu.memory_space<vmem>>, vector<32x1xf32>
    %110 = vector.extract_strided_slice %16 {offsets = [15, 0], sizes = [1, 256], strides = [1, 1]} : vector<16x256xf32> to vector<1x256xf32>
    %111 = vector.broadcast %109 : vector<32x1xf32> to vector<32x256xf32>
    %112 = vector.broadcast %110 : vector<1x256xf32> to vector<32x256xf32>
    %113 = arith.mulf %111, %112 : vector<32x256xf32>
    %114 = arith.addf %108, %113 : vector<32x256xf32>
    %cst_22 = arith.constant 0.000000e+00 : f32
    %115 = vector.broadcast %cst_22 : f32 to vector<32x256xf32>
    %116 = arith.maximumf %114, %115 : vector<32x256xf32>
    %c0_23 = arith.constant 0 : index
    %c20 = arith.constant 20 : index
    %117 = vector.load %arg2[%c0_23, %c20] : memref<32x53xf32, #tpu.memory_space<vmem>>, vector<2x1xf32>
    %118 = vector.extract_strided_slice %116 {offsets = [0, 0], sizes = [1, 256], strides = [1, 1]} : vector<32x256xf32> to vector<1x256xf32>
    %119 = vector.broadcast %117 : vector<2x1xf32> to vector<2x256xf32>
    %120 = vector.broadcast %118 : vector<1x256xf32> to vector<2x256xf32>
    %121 = arith.mulf %119, %120 : vector<2x256xf32>
    %c0_24 = arith.constant 0 : index
    %c52 = arith.constant 52 : index
    %122 = vector.load %arg2[%c0_24, %c52] : memref<32x53xf32, #tpu.memory_space<vmem>>, vector<2x1xf32>
    %123 = vector.broadcast %122 : vector<2x1xf32> to vector<2x256xf32>
    %124 = arith.addf %121, %123 : vector<2x256xf32>
    %c0_25 = arith.constant 0 : index
    %c21 = arith.constant 21 : index
    %125 = vector.load %arg2[%c0_25, %c21] : memref<32x53xf32, #tpu.memory_space<vmem>>, vector<2x1xf32>
    %126 = vector.extract_strided_slice %116 {offsets = [1, 0], sizes = [1, 256], strides = [1, 1]} : vector<32x256xf32> to vector<1x256xf32>
    %127 = vector.broadcast %125 : vector<2x1xf32> to vector<2x256xf32>
    %128 = vector.broadcast %126 : vector<1x256xf32> to vector<2x256xf32>
    %129 = arith.mulf %127, %128 : vector<2x256xf32>
    %130 = arith.addf %124, %129 : vector<2x256xf32>
    %c0_26 = arith.constant 0 : index
    %c22 = arith.constant 22 : index
    %131 = vector.load %arg2[%c0_26, %c22] : memref<32x53xf32, #tpu.memory_space<vmem>>, vector<2x1xf32>
    %132 = vector.extract_strided_slice %116 {offsets = [2, 0], sizes = [1, 256], strides = [1, 1]} : vector<32x256xf32> to vector<1x256xf32>
    %133 = vector.broadcast %131 : vector<2x1xf32> to vector<2x256xf32>
    %134 = vector.broadcast %132 : vector<1x256xf32> to vector<2x256xf32>
    %135 = arith.mulf %133, %134 : vector<2x256xf32>
    %136 = arith.addf %130, %135 : vector<2x256xf32>
    %c0_27 = arith.constant 0 : index
    %c23 = arith.constant 23 : index
    %137 = vector.load %arg2[%c0_27, %c23] : memref<32x53xf32, #tpu.memory_space<vmem>>, vector<2x1xf32>
    %138 = vector.extract_strided_slice %116 {offsets = [3, 0], sizes = [1, 256], strides = [1, 1]} : vector<32x256xf32> to vector<1x256xf32>
    %139 = vector.broadcast %137 : vector<2x1xf32> to vector<2x256xf32>
    %140 = vector.broadcast %138 : vector<1x256xf32> to vector<2x256xf32>
    %141 = arith.mulf %139, %140 : vector<2x256xf32>
    %142 = arith.addf %136, %141 : vector<2x256xf32>
    %c0_28 = arith.constant 0 : index
    %c24 = arith.constant 24 : index
    %143 = vector.load %arg2[%c0_28, %c24] : memref<32x53xf32, #tpu.memory_space<vmem>>, vector<2x1xf32>
    %144 = vector.extract_strided_slice %116 {offsets = [4, 0], sizes = [1, 256], strides = [1, 1]} : vector<32x256xf32> to vector<1x256xf32>
    %145 = vector.broadcast %143 : vector<2x1xf32> to vector<2x256xf32>
    %146 = vector.broadcast %144 : vector<1x256xf32> to vector<2x256xf32>
    %147 = arith.mulf %145, %146 : vector<2x256xf32>
    %148 = arith.addf %142, %147 : vector<2x256xf32>
    %c0_29 = arith.constant 0 : index
    %c25 = arith.constant 25 : index
    %149 = vector.load %arg2[%c0_29, %c25] : memref<32x53xf32, #tpu.memory_space<vmem>>, vector<2x1xf32>
    %150 = vector.extract_strided_slice %116 {offsets = [5, 0], sizes = [1, 256], strides = [1, 1]} : vector<32x256xf32> to vector<1x256xf32>
    %151 = vector.broadcast %149 : vector<2x1xf32> to vector<2x256xf32>
    %152 = vector.broadcast %150 : vector<1x256xf32> to vector<2x256xf32>
    %153 = arith.mulf %151, %152 : vector<2x256xf32>
    %154 = arith.addf %148, %153 : vector<2x256xf32>
    %c0_30 = arith.constant 0 : index
    %c26 = arith.constant 26 : index
    %155 = vector.load %arg2[%c0_30, %c26] : memref<32x53xf32, #tpu.memory_space<vmem>>, vector<2x1xf32>
    %156 = vector.extract_strided_slice %116 {offsets = [6, 0], sizes = [1, 256], strides = [1, 1]} : vector<32x256xf32> to vector<1x256xf32>
    %157 = vector.broadcast %155 : vector<2x1xf32> to vector<2x256xf32>
    %158 = vector.broadcast %156 : vector<1x256xf32> to vector<2x256xf32>
    %159 = arith.mulf %157, %158 : vector<2x256xf32>
    %160 = arith.addf %154, %159 : vector<2x256xf32>
    %c0_31 = arith.constant 0 : index
    %c27 = arith.constant 27 : index
    %161 = vector.load %arg2[%c0_31, %c27] : memref<32x53xf32, #tpu.memory_space<vmem>>, vector<2x1xf32>
    %162 = vector.extract_strided_slice %116 {offsets = [7, 0], sizes = [1, 256], strides = [1, 1]} : vector<32x256xf32> to vector<1x256xf32>
    %163 = vector.broadcast %161 : vector<2x1xf32> to vector<2x256xf32>
    %164 = vector.broadcast %162 : vector<1x256xf32> to vector<2x256xf32>
    %165 = arith.mulf %163, %164 : vector<2x256xf32>
    %166 = arith.addf %160, %165 : vector<2x256xf32>
    %c0_32 = arith.constant 0 : index
    %c28 = arith.constant 28 : index
    %167 = vector.load %arg2[%c0_32, %c28] : memref<32x53xf32, #tpu.memory_space<vmem>>, vector<2x1xf32>
    %168 = vector.extract_strided_slice %116 {offsets = [8, 0], sizes = [1, 256], strides = [1, 1]} : vector<32x256xf32> to vector<1x256xf32>
    %169 = vector.broadcast %167 : vector<2x1xf32> to vector<2x256xf32>
    %170 = vector.broadcast %168 : vector<1x256xf32> to vector<2x256xf32>
    %171 = arith.mulf %169, %170 : vector<2x256xf32>
    %172 = arith.addf %166, %171 : vector<2x256xf32>
    %c0_33 = arith.constant 0 : index
    %c29 = arith.constant 29 : index
    %173 = vector.load %arg2[%c0_33, %c29] : memref<32x53xf32, #tpu.memory_space<vmem>>, vector<2x1xf32>
    %174 = vector.extract_strided_slice %116 {offsets = [9, 0], sizes = [1, 256], strides = [1, 1]} : vector<32x256xf32> to vector<1x256xf32>
    %175 = vector.broadcast %173 : vector<2x1xf32> to vector<2x256xf32>
    %176 = vector.broadcast %174 : vector<1x256xf32> to vector<2x256xf32>
    %177 = arith.mulf %175, %176 : vector<2x256xf32>
    %178 = arith.addf %172, %177 : vector<2x256xf32>
    %c0_34 = arith.constant 0 : index
    %c30 = arith.constant 30 : index
    %179 = vector.load %arg2[%c0_34, %c30] : memref<32x53xf32, #tpu.memory_space<vmem>>, vector<2x1xf32>
    %180 = vector.extract_strided_slice %116 {offsets = [10, 0], sizes = [1, 256], strides = [1, 1]} : vector<32x256xf32> to vector<1x256xf32>
    %181 = vector.broadcast %179 : vector<2x1xf32> to vector<2x256xf32>
    %182 = vector.broadcast %180 : vector<1x256xf32> to vector<2x256xf32>
    %183 = arith.mulf %181, %182 : vector<2x256xf32>
    %184 = arith.addf %178, %183 : vector<2x256xf32>
    %c0_35 = arith.constant 0 : index
    %c31 = arith.constant 31 : index
    %185 = vector.load %arg2[%c0_35, %c31] : memref<32x53xf32, #tpu.memory_space<vmem>>, vector<2x1xf32>
    %186 = vector.extract_strided_slice %116 {offsets = [11, 0], sizes = [1, 256], strides = [1, 1]} : vector<32x256xf32> to vector<1x256xf32>
    %187 = vector.broadcast %185 : vector<2x1xf32> to vector<2x256xf32>
    %188 = vector.broadcast %186 : vector<1x256xf32> to vector<2x256xf32>
    %189 = arith.mulf %187, %188 : vector<2x256xf32>
    %190 = arith.addf %184, %189 : vector<2x256xf32>
    %c0_36 = arith.constant 0 : index
    %c32 = arith.constant 32 : index
    %191 = vector.load %arg2[%c0_36, %c32] : memref<32x53xf32, #tpu.memory_space<vmem>>, vector<2x1xf32>
    %192 = vector.extract_strided_slice %116 {offsets = [12, 0], sizes = [1, 256], strides = [1, 1]} : vector<32x256xf32> to vector<1x256xf32>
    %193 = vector.broadcast %191 : vector<2x1xf32> to vector<2x256xf32>
    %194 = vector.broadcast %192 : vector<1x256xf32> to vector<2x256xf32>
    %195 = arith.mulf %193, %194 : vector<2x256xf32>
    %196 = arith.addf %190, %195 : vector<2x256xf32>
    %c0_37 = arith.constant 0 : index
    %c33 = arith.constant 33 : index
    %197 = vector.load %arg2[%c0_37, %c33] : memref<32x53xf32, #tpu.memory_space<vmem>>, vector<2x1xf32>
    %198 = vector.extract_strided_slice %116 {offsets = [13, 0], sizes = [1, 256], strides = [1, 1]} : vector<32x256xf32> to vector<1x256xf32>
    %199 = vector.broadcast %197 : vector<2x1xf32> to vector<2x256xf32>
    %200 = vector.broadcast %198 : vector<1x256xf32> to vector<2x256xf32>
    %201 = arith.mulf %199, %200 : vector<2x256xf32>
    %202 = arith.addf %196, %201 : vector<2x256xf32>
    %c0_38 = arith.constant 0 : index
    %c34 = arith.constant 34 : index
    %203 = vector.load %arg2[%c0_38, %c34] : memref<32x53xf32, #tpu.memory_space<vmem>>, vector<2x1xf32>
    %204 = vector.extract_strided_slice %116 {offsets = [14, 0], sizes = [1, 256], strides = [1, 1]} : vector<32x256xf32> to vector<1x256xf32>
    %205 = vector.broadcast %203 : vector<2x1xf32> to vector<2x256xf32>
    %206 = vector.broadcast %204 : vector<1x256xf32> to vector<2x256xf32>
    %207 = arith.mulf %205, %206 : vector<2x256xf32>
    %208 = arith.addf %202, %207 : vector<2x256xf32>
    %c0_39 = arith.constant 0 : index
    %c35 = arith.constant 35 : index
    %209 = vector.load %arg2[%c0_39, %c35] : memref<32x53xf32, #tpu.memory_space<vmem>>, vector<2x1xf32>
    %210 = vector.extract_strided_slice %116 {offsets = [15, 0], sizes = [1, 256], strides = [1, 1]} : vector<32x256xf32> to vector<1x256xf32>
    %211 = vector.broadcast %209 : vector<2x1xf32> to vector<2x256xf32>
    %212 = vector.broadcast %210 : vector<1x256xf32> to vector<2x256xf32>
    %213 = arith.mulf %211, %212 : vector<2x256xf32>
    %214 = arith.addf %208, %213 : vector<2x256xf32>
    %c0_40 = arith.constant 0 : index
    %c36 = arith.constant 36 : index
    %215 = vector.load %arg2[%c0_40, %c36] : memref<32x53xf32, #tpu.memory_space<vmem>>, vector<2x1xf32>
    %216 = vector.extract_strided_slice %116 {offsets = [16, 0], sizes = [1, 256], strides = [1, 1]} : vector<32x256xf32> to vector<1x256xf32>
    %217 = vector.broadcast %215 : vector<2x1xf32> to vector<2x256xf32>
    %218 = vector.broadcast %216 : vector<1x256xf32> to vector<2x256xf32>
    %219 = arith.mulf %217, %218 : vector<2x256xf32>
    %220 = arith.addf %214, %219 : vector<2x256xf32>
    %c0_41 = arith.constant 0 : index
    %c37 = arith.constant 37 : index
    %221 = vector.load %arg2[%c0_41, %c37] : memref<32x53xf32, #tpu.memory_space<vmem>>, vector<2x1xf32>
    %222 = vector.extract_strided_slice %116 {offsets = [17, 0], sizes = [1, 256], strides = [1, 1]} : vector<32x256xf32> to vector<1x256xf32>
    %223 = vector.broadcast %221 : vector<2x1xf32> to vector<2x256xf32>
    %224 = vector.broadcast %222 : vector<1x256xf32> to vector<2x256xf32>
    %225 = arith.mulf %223, %224 : vector<2x256xf32>
    %226 = arith.addf %220, %225 : vector<2x256xf32>
    %c0_42 = arith.constant 0 : index
    %c38 = arith.constant 38 : index
    %227 = vector.load %arg2[%c0_42, %c38] : memref<32x53xf32, #tpu.memory_space<vmem>>, vector<2x1xf32>
    %228 = vector.extract_strided_slice %116 {offsets = [18, 0], sizes = [1, 256], strides = [1, 1]} : vector<32x256xf32> to vector<1x256xf32>
    %229 = vector.broadcast %227 : vector<2x1xf32> to vector<2x256xf32>
    %230 = vector.broadcast %228 : vector<1x256xf32> to vector<2x256xf32>
    %231 = arith.mulf %229, %230 : vector<2x256xf32>
    %232 = arith.addf %226, %231 : vector<2x256xf32>
    %c0_43 = arith.constant 0 : index
    %c39 = arith.constant 39 : index
    %233 = vector.load %arg2[%c0_43, %c39] : memref<32x53xf32, #tpu.memory_space<vmem>>, vector<2x1xf32>
    %234 = vector.extract_strided_slice %116 {offsets = [19, 0], sizes = [1, 256], strides = [1, 1]} : vector<32x256xf32> to vector<1x256xf32>
    %235 = vector.broadcast %233 : vector<2x1xf32> to vector<2x256xf32>
    %236 = vector.broadcast %234 : vector<1x256xf32> to vector<2x256xf32>
    %237 = arith.mulf %235, %236 : vector<2x256xf32>
    %238 = arith.addf %232, %237 : vector<2x256xf32>
    %c0_44 = arith.constant 0 : index
    %c40 = arith.constant 40 : index
    %239 = vector.load %arg2[%c0_44, %c40] : memref<32x53xf32, #tpu.memory_space<vmem>>, vector<2x1xf32>
    %240 = vector.extract_strided_slice %116 {offsets = [20, 0], sizes = [1, 256], strides = [1, 1]} : vector<32x256xf32> to vector<1x256xf32>
    %241 = vector.broadcast %239 : vector<2x1xf32> to vector<2x256xf32>
    %242 = vector.broadcast %240 : vector<1x256xf32> to vector<2x256xf32>
    %243 = arith.mulf %241, %242 : vector<2x256xf32>
    %244 = arith.addf %238, %243 : vector<2x256xf32>
    %c0_45 = arith.constant 0 : index
    %c41 = arith.constant 41 : index
    %245 = vector.load %arg2[%c0_45, %c41] : memref<32x53xf32, #tpu.memory_space<vmem>>, vector<2x1xf32>
    %246 = vector.extract_strided_slice %116 {offsets = [21, 0], sizes = [1, 256], strides = [1, 1]} : vector<32x256xf32> to vector<1x256xf32>
    %247 = vector.broadcast %245 : vector<2x1xf32> to vector<2x256xf32>
    %248 = vector.broadcast %246 : vector<1x256xf32> to vector<2x256xf32>
    %249 = arith.mulf %247, %248 : vector<2x256xf32>
    %250 = arith.addf %244, %249 : vector<2x256xf32>
    %c0_46 = arith.constant 0 : index
    %c42 = arith.constant 42 : index
    %251 = vector.load %arg2[%c0_46, %c42] : memref<32x53xf32, #tpu.memory_space<vmem>>, vector<2x1xf32>
    %252 = vector.extract_strided_slice %116 {offsets = [22, 0], sizes = [1, 256], strides = [1, 1]} : vector<32x256xf32> to vector<1x256xf32>
    %253 = vector.broadcast %251 : vector<2x1xf32> to vector<2x256xf32>
    %254 = vector.broadcast %252 : vector<1x256xf32> to vector<2x256xf32>
    %255 = arith.mulf %253, %254 : vector<2x256xf32>
    %256 = arith.addf %250, %255 : vector<2x256xf32>
    %c0_47 = arith.constant 0 : index
    %c43 = arith.constant 43 : index
    %257 = vector.load %arg2[%c0_47, %c43] : memref<32x53xf32, #tpu.memory_space<vmem>>, vector<2x1xf32>
    %258 = vector.extract_strided_slice %116 {offsets = [23, 0], sizes = [1, 256], strides = [1, 1]} : vector<32x256xf32> to vector<1x256xf32>
    %259 = vector.broadcast %257 : vector<2x1xf32> to vector<2x256xf32>
    %260 = vector.broadcast %258 : vector<1x256xf32> to vector<2x256xf32>
    %261 = arith.mulf %259, %260 : vector<2x256xf32>
    %262 = arith.addf %256, %261 : vector<2x256xf32>
    %c0_48 = arith.constant 0 : index
    %c44 = arith.constant 44 : index
    %263 = vector.load %arg2[%c0_48, %c44] : memref<32x53xf32, #tpu.memory_space<vmem>>, vector<2x1xf32>
    %264 = vector.extract_strided_slice %116 {offsets = [24, 0], sizes = [1, 256], strides = [1, 1]} : vector<32x256xf32> to vector<1x256xf32>
    %265 = vector.broadcast %263 : vector<2x1xf32> to vector<2x256xf32>
    %266 = vector.broadcast %264 : vector<1x256xf32> to vector<2x256xf32>
    %267 = arith.mulf %265, %266 : vector<2x256xf32>
    %268 = arith.addf %262, %267 : vector<2x256xf32>
    %c0_49 = arith.constant 0 : index
    %c45 = arith.constant 45 : index
    %269 = vector.load %arg2[%c0_49, %c45] : memref<32x53xf32, #tpu.memory_space<vmem>>, vector<2x1xf32>
    %270 = vector.extract_strided_slice %116 {offsets = [25, 0], sizes = [1, 256], strides = [1, 1]} : vector<32x256xf32> to vector<1x256xf32>
    %271 = vector.broadcast %269 : vector<2x1xf32> to vector<2x256xf32>
    %272 = vector.broadcast %270 : vector<1x256xf32> to vector<2x256xf32>
    %273 = arith.mulf %271, %272 : vector<2x256xf32>
    %274 = arith.addf %268, %273 : vector<2x256xf32>
    %c0_50 = arith.constant 0 : index
    %c46 = arith.constant 46 : index
    %275 = vector.load %arg2[%c0_50, %c46] : memref<32x53xf32, #tpu.memory_space<vmem>>, vector<2x1xf32>
    %276 = vector.extract_strided_slice %116 {offsets = [26, 0], sizes = [1, 256], strides = [1, 1]} : vector<32x256xf32> to vector<1x256xf32>
    %277 = vector.broadcast %275 : vector<2x1xf32> to vector<2x256xf32>
    %278 = vector.broadcast %276 : vector<1x256xf32> to vector<2x256xf32>
    %279 = arith.mulf %277, %278 : vector<2x256xf32>
    %280 = arith.addf %274, %279 : vector<2x256xf32>
    %c0_51 = arith.constant 0 : index
    %c47 = arith.constant 47 : index
    %281 = vector.load %arg2[%c0_51, %c47] : memref<32x53xf32, #tpu.memory_space<vmem>>, vector<2x1xf32>
    %282 = vector.extract_strided_slice %116 {offsets = [27, 0], sizes = [1, 256], strides = [1, 1]} : vector<32x256xf32> to vector<1x256xf32>
    %283 = vector.broadcast %281 : vector<2x1xf32> to vector<2x256xf32>
    %284 = vector.broadcast %282 : vector<1x256xf32> to vector<2x256xf32>
    %285 = arith.mulf %283, %284 : vector<2x256xf32>
    %286 = arith.addf %280, %285 : vector<2x256xf32>
    %c0_52 = arith.constant 0 : index
    %c48 = arith.constant 48 : index
    %287 = vector.load %arg2[%c0_52, %c48] : memref<32x53xf32, #tpu.memory_space<vmem>>, vector<2x1xf32>
    %288 = vector.extract_strided_slice %116 {offsets = [28, 0], sizes = [1, 256], strides = [1, 1]} : vector<32x256xf32> to vector<1x256xf32>
    %289 = vector.broadcast %287 : vector<2x1xf32> to vector<2x256xf32>
    %290 = vector.broadcast %288 : vector<1x256xf32> to vector<2x256xf32>
    %291 = arith.mulf %289, %290 : vector<2x256xf32>
    %292 = arith.addf %286, %291 : vector<2x256xf32>
    %c0_53 = arith.constant 0 : index
    %c49 = arith.constant 49 : index
    %293 = vector.load %arg2[%c0_53, %c49] : memref<32x53xf32, #tpu.memory_space<vmem>>, vector<2x1xf32>
    %294 = vector.extract_strided_slice %116 {offsets = [29, 0], sizes = [1, 256], strides = [1, 1]} : vector<32x256xf32> to vector<1x256xf32>
    %295 = vector.broadcast %293 : vector<2x1xf32> to vector<2x256xf32>
    %296 = vector.broadcast %294 : vector<1x256xf32> to vector<2x256xf32>
    %297 = arith.mulf %295, %296 : vector<2x256xf32>
    %298 = arith.addf %292, %297 : vector<2x256xf32>
    %c0_54 = arith.constant 0 : index
    %c50 = arith.constant 50 : index
    %299 = vector.load %arg2[%c0_54, %c50] : memref<32x53xf32, #tpu.memory_space<vmem>>, vector<2x1xf32>
    %300 = vector.extract_strided_slice %116 {offsets = [30, 0], sizes = [1, 256], strides = [1, 1]} : vector<32x256xf32> to vector<1x256xf32>
    %301 = vector.broadcast %299 : vector<2x1xf32> to vector<2x256xf32>
    %302 = vector.broadcast %300 : vector<1x256xf32> to vector<2x256xf32>
    %303 = arith.mulf %301, %302 : vector<2x256xf32>
    %304 = arith.addf %298, %303 : vector<2x256xf32>
    %c0_55 = arith.constant 0 : index
    %c51 = arith.constant 51 : index
    %305 = vector.load %arg2[%c0_55, %c51] : memref<32x53xf32, #tpu.memory_space<vmem>>, vector<2x1xf32>
    %306 = vector.extract_strided_slice %116 {offsets = [31, 0], sizes = [1, 256], strides = [1, 1]} : vector<32x256xf32> to vector<1x256xf32>
    %307 = vector.broadcast %305 : vector<2x1xf32> to vector<2x256xf32>
    %308 = vector.broadcast %306 : vector<1x256xf32> to vector<2x256xf32>
    %309 = arith.mulf %307, %308 : vector<2x256xf32>
    %310 = arith.addf %304, %309 : vector<2x256xf32>
    %c0_56 = arith.constant 0 : index
    %c0_57 = arith.constant 0 : index
    %311 = vector.load %arg3[%c0_56, %c0_57] : memref<2x256xf32, #tpu.memory_space<vmem>>, vector<2x256xf32>
    tpu.vector_store %arg3[%c0_56, %c0_57], %310 {strides = array<i32>} : memref<2x256xf32, #tpu.memory_space<vmem>>, vector<2x256xf32>,
    return
  }
  func.func @transform_0(%arg0: i32) -> (i32, i32) {
    %c0_i32 = arith.constant 0 : i32
    %c0_i32_0 = arith.constant 0 : i32
    return %c0_i32, %arg0 : i32, i32
  }
  func.func @transform_1(%arg0: i32) -> (i32, i32) {
    %c0_i32 = arith.constant 0 : i32
    %c0_i32_0 = arith.constant 0 : i32
    %c0_i32_1 = arith.constant 0 : i32
    return %c0_i32, %c0_i32_0 : i32, i32
  }
  func.func @transform_2(%arg0: i32) -> (i32, i32) {
    %c0_i32 = arith.constant 0 : i32
    %c0_i32_0 = arith.constant 0 : i32
    return %c0_i32, %arg0 : i32, i32
  }
}

</mosaic_0001>

<bundles_post_ra>
// kernel: tpu_custom_call.1
= control target key start
LH: loop header
LB: loop body
LE: loop exit
PB: predicated region body
PF: predicated region fallthrough
CT: control target
= control target key end

     0   :  { %7 = vsyncpa [#allocation3], 0  ;;  %s2232_s0 = inlined_call_operand.hbm [shape: f32[2,256], index: 0, kind: input, shape index: {}]   ;;  %s2233_s1 = inlined_call_operand.hbm [shape: f32[32,53], index: 1, kind: input, shape index: {}]   ;;  %s2234_s2 = inlined_call_operand.hbm [shape: f32[2,256], index: 2, kind: output, shape index: {}]  }
   0x1   :  { %8 = vsyncpa [#allocation6], 0 }
   0x2   :  { %9 = vsyncpa [#allocation4], 0  ;;  %s1545_s9 = smov [#allocation2]   ;;  %s1546_s11 = smov [#allocation5]  }
   0x3   :  { %s16_s10 = sshll.u32 %s1545_s9, 4  ;;  %s25_s12 = sshll.u32 %s1546_s11, 4  ;;  %s17_s10 = int_to_ptr.vmem [resolvable:$true] %s16_s10  ;;  %s1618_s12 = int_to_ptr.vmem [resolvable:$true] %s25_s12 }
   0x4   :  { %s1473_s15 = scalar_lea.hbm %s2232_s0, 64 }
   0x5   :  { %p1474_p0 = scmp.ne.s32.totalorder %s2232_s0, %s1473_s15  ;;  %p1477_p1 = scmp.lt.u32.totalorder %s1473_s15, %s2232_s0 }
   0x7   :  { %p1479_p2 = pnand %p1477_p1, %p1474_p0 }
   0x9   :  { %1482 = shalt.err (!%p1479_p2)
}
   0xa   :  { %s1483_s20 = scalar_lea.vmem %s17_s10, 64  ;;  %p1488_p4 = scmp.lt.s32.totalorder %s17_s10, %s17_s10 }
   0xb   :  { %p1484_p3 = scmp.ne.s32.totalorder %s17_s10, %s1483_s20  ;;  %p1489_p5 = scmp.lt.s32.totalorder %s1483_s20, %s1483_s20 }
   0xd   :  { %p1490_p6 = por %p1489_p5, %p1488_p4 }
   0xf   :  { %p1491_p7 = pnand %p1490_p6, %p1484_p3 }
  0x11   :  { %1494 = shalt.err (!%p1491_p7)
}
  0x12   :  { %19 = dma.hbm_to_vmem [thread:$0]  %s2232_s0, 64, %s17_s10, [#allocation3]  }
  0x13   :  { %s1495_s25 = scalar_lea.hbm %s2233_s1, 512 }
  0x14   :  { %p1496_p8 = scmp.ne.s32.totalorder %s2233_s1, %s1495_s25  ;;  %p1499_p9 = scmp.lt.u32.totalorder %s1495_s25, %s2233_s1 }
  0x16   :  { %p1501_p10 = pnand %p1499_p9, %p1496_p8 }
  0x18   :  { %1504 = shalt.err (!%p1501_p10)
}
  0x19   :  { %s1505_s30 = scalar_lea.vmem %s1618_s12, 512  ;;  %p1510_p12 = scmp.lt.s32.totalorder %s1618_s12, %s1618_s12 }
  0x1a   :  { %p1506_p11 = scmp.ne.s32.totalorder %s1618_s12, %s1505_s30  ;;  %p1511_p13 = scmp.lt.s32.totalorder %s1505_s30, %s1505_s30 }
  0x1c   :  { %p1512_p0 = por %p1511_p13, %p1510_p12 }
  0x1e   :  { %p1513_p1 = pnand %p1512_p0, %p1506_p11 }
  0x20   :  { %1516 = shalt.err (!%p1513_p1)
}
  0x21   :  { %s1547_s0 = smov 128   ;;  %s1548_s3 = smov 8  }
  0x22   :  { %31 = dma.hbm_to_vmem [thread:$0]  %s2233_s1, 512, %s1618_s12, [#allocation6], %s1547_s0, %s1547_s0, %s1548_s3  }
  0x23   :  { %1539 = dma.done.wait [#allocation3], 64  }
  0x24   :  { %1540 = vsyncadd [#allocation3], 4294967232 }
  0x25   :  { %1541 = dma.done.wait [#allocation6], 512  }
  0x26   :  { %1542 = vsyncadd [#allocation6], 4294966784  ;;  %v1549_v0 = vmov 2   ;;  %v1550_v1 = vmov 0   ;;  %v1649_v2 = vld [vmem:[#allocation5] sm:$0xff]  ;;  %v1653_v3 = vld [vmem:[#allocation5 + $0x8] sm:$0xff]  ;;  %v52_v22 = vlaneseq }
  0x27   :  { %1402 = vset.pattern.permute.xlu1 %v1549_v0  ;;  %1401 = vset.pattern.permute.xlu0 %v1550_v1  ;;  %v1551_v4 = vmov 1   ;;  %v1552_v5 = vmov 3   ;;  %v1661_v6 = vld [vmem:[#allocation5 + $0x10] sm:$0xff]  ;;  %v1553_v7 = vmov 19   ;;  %v1665_v8 = vld [vmem:[#allocation5 + $0x18] sm:$0xff]  ;;  %v1554_v9 = vmov 4  }
  0x28   :  { %75 = vperm.xlu1 %1402, %v1649_v2   ;;  %43 = vperm.xlu0 %1401, %v1649_v2   ;;  %v1555_v10 = vmov 5   ;;  %v1556_v11 = vmov 6   ;;  %v1557_v12 = vmov 7   ;;  %v1558_v13 = vmov 8   ;;  %v38_v27 = vld [vmem:[#allocation2] sm:$0xf] }
  0x29   :  { %v1559_v14 = vmov 9   ;;  %v1560_v15 = vmov 10   ;;  %v1561_v16 = vmov 11   ;;  %v1562_v17 = vmov 12   ;;  %v1735_v35 = vld [vmem:[#allocation5] sm:$0x3] }
  0x2a   :  { %v1563_v18 = vmov 13   ;;  %v1564_v19 = vmov 14   ;;  %v1565_v20 = vmov 15   ;;  %v1566_v21 = vmov 16   ;;  %s1602_s1 = smov [#allocation7]  }
  0x2b   :  { %v1567_v23 = vmov 17   ;;  %v1714_v24 = vshrl.u32 %v52_v22, 7  ;;  %v1568_v28 = vmov 18   ;;  %v1569_v40 = vmov 20   ;;  %s1332_s6 = sshll.u32 %s1602_s1, 4  ;;  %s1333_s6 = int_to_ptr.vmem [resolvable:$true] %s1332_s6 }
  0x2c   :  { %79 = vperm.xlu1 %1402, %v1653_v3   ;;  %48 = vperm.xlu0 %1401, %v1653_v3   ;;  %v1570_v47 = vmov 22   ;;  %v1571_v56 = vmov 25   ;;  %s1517_s7 = scalar_lea.vmem %s1333_s6, 64  ;;  %p1522_p3 = scmp.lt.s32.totalorder %s1333_s6, %s1333_s6 }
  0x2d   :  { %v1719_v25 = vsub.s32 0, %v1714_v24  ;;  %v1722_v26 = vsub.s32 2, %v1714_v24  ;;  %v1729_v31 = vsub.s32 1, %v1714_v24  ;;  %v1732_v32 = vsub.s32 3, %v1714_v24  ;;  %p1518_p2 = scmp.ne.s32.totalorder %s1333_s6, %s1517_s7  ;;  %p1523_p4 = scmp.lt.s32.totalorder %s1517_s7, %s1517_s7 }
  0x2f   :  { %2238 = vst [vmem:[#allocation11_spill] sm:$0xff] %v1719_v25  ;;  %v55_v29 = vrot.slane %v38_v27, %v1719_v25  ;;  %v59_v30 = vrot.slane %v38_v27, %v1722_v26  ;;  %v97_v38 = vrot.slane %v38_v27, %v1729_v31  ;;  %v101_v39 = vrot.slane %v38_v27, %v1732_v32  ;;  %p1524_p5 = por %p1523_p4, %p1522_p3 }
  0x30   :  { %1404 = vset.pattern.permute.xlu1 %v1551_v4  ;;  %1403 = vset.pattern.permute.xlu0 %v1551_v4 }
  0x31   :  { %91 = vperm.xlu1 %1404, %v1653_v3   ;;  %87 = vperm.xlu0 %1403, %v1649_v2   ;;  %v1739_v36 = vrot.slane %v55_v29, %v1719_v25  ;;  %v1742_v37 = vrot.slane %v59_v30, %v1719_v25  ;;  %v1755_v45 = vrot.slane %v97_v38, %v1729_v31  ;;  %v1574_v30 = vmov 34   ;;  %p1525_p6 = pnand %p1524_p5, %p1518_p2 }
  0x32   :  { %v1758_v46 = vrot.slane %v101_v39, %v1729_v31 }
  0x35   :  { %1405 = vset.pattern.permute.xlu1 %v1552_v5  ;;  %1406 = vset.pattern.permute.xlu0 %v1552_v5  ;;  %v1572_v5 = vmov 28  }
  0x36   :  { %130 = vperm.xlu1 %1405, %v1649_v2   ;;  %135 = vperm.xlu0 %1406, %v1653_v3  }
  0x3a   :  { %140 = vperm.xlu1 %1405, %v1661_v6   ;;  %1407 = vset.pattern.permute.xlu0 %v1553_v7 }
  0x3b   :  { %165 = vperm.xlu0 %1407, %v1649_v2  }
  0x3e   :  { %145 = vperm.xlu1 %1405, %v1665_v8  }
  0x3f   :  { %177 = vperm.xlu0 %1407, %v1665_v8  }
  0x42   :  { %1408 = vset.pattern.permute.xlu1 %v1553_v7 }
  0x43   :  { %169 = vperm.xlu1 %1408, %v1653_v3   ;;  %1410 = vset.pattern.permute.xlu0 %v1554_v9 }
  0x44   :  { %193 = vperm.xlu0 %1410, %v1653_v3  }
  0x47   :  { %173 = vperm.xlu1 %1408, %v1661_v6  }
  0x48   :  { %1411 = vset.pattern.permute.xlu0 %v1555_v10 }
  0x49   :  { %229 = vperm.xlu0 %1411, %v1649_v2  }
  0x4b   :  { %1409 = vset.pattern.permute.xlu1 %v1554_v9 }
  0x4c   :  { %189 = vperm.xlu1 %1409, %v1649_v2  }
  0x4d   :  { %241 = vperm.xlu0 %1411, %v1665_v8  }
  0x50   :  { %197 = vperm.xlu1 %1409, %v1661_v6  }
  0x51   :  { %1414 = vset.pattern.permute.xlu0 %v1556_v11 }
  0x52   :  { %273 = vperm.xlu0 %1414, %v1653_v3  }
  0x54   :  { %201 = vperm.xlu1 %1409, %v1665_v8  }
  0x56   :  { %1415 = vset.pattern.permute.xlu0 %v1557_v12 }
  0x57   :  { %309 = vperm.xlu0 %1415, %v1649_v2  }
  0x58   :  { %1412 = vset.pattern.permute.xlu1 %v1555_v10 }
  0x59   :  { %233 = vperm.xlu1 %1412, %v1653_v3  }
  0x5b   :  { %321 = vperm.xlu0 %1415, %v1665_v8  }
  0x5d   :  { %237 = vperm.xlu1 %1412, %v1661_v6  }
  0x5f   :  { %1418 = vset.pattern.permute.xlu0 %v1558_v13 }
  0x60   :  { %353 = vperm.xlu0 %1418, %v1653_v3  }
  0x61   :  { %1413 = vset.pattern.permute.xlu1 %v1556_v11 }
  0x62   :  { %269 = vperm.xlu1 %1413, %v1649_v2  }
  0x64   :  { %1419 = vset.pattern.permute.xlu0 %v1559_v14 }
  0x65   :  { %389 = vperm.xlu0 %1419, %v1649_v2  }
  0x66   :  { %277 = vperm.xlu1 %1413, %v1661_v6  }
  0x69   :  { %401 = vperm.xlu0 %1419, %v1665_v8  }
  0x6a   :  { %281 = vperm.xlu1 %1413, %v1665_v8  }
  0x6d   :  { %1422 = vset.pattern.permute.xlu0 %v1560_v15 }
  0x6e   :  { %1416 = vset.pattern.permute.xlu1 %v1557_v12  ;;  %433 = vperm.xlu0 %1422, %v1653_v3   ;;  %v1573_v12 = vmov 31  }
  0x6f   :  { %313 = vperm.xlu1 %1416, %v1653_v3  }
  0x72   :  { %1423 = vset.pattern.permute.xlu0 %v1561_v16 }
  0x73   :  { %317 = vperm.xlu1 %1416, %v1661_v6   ;;  %469 = vperm.xlu0 %1423, %v1649_v2  }
  0x77   :  { %1417 = vset.pattern.permute.xlu1 %v1558_v13  ;;  %481 = vperm.xlu0 %1423, %v1665_v8  }
  0x78   :  { %349 = vperm.xlu1 %1417, %v1649_v2  }
  0x7b   :  { %1426 = vset.pattern.permute.xlu0 %v1562_v17 }
  0x7c   :  { %357 = vperm.xlu1 %1417, %v1661_v6   ;;  %513 = vperm.xlu0 %1426, %v1653_v3  }
  0x80   :  { %361 = vperm.xlu1 %1417, %v1665_v8   ;;  %1427 = vset.pattern.permute.xlu0 %v1563_v18 }
  0x81   :  { %549 = vperm.xlu0 %1427, %v1649_v2  }
  0x84   :  { %1420 = vset.pattern.permute.xlu1 %v1559_v14 }
  0x85   :  { %393 = vperm.xlu1 %1420, %v1653_v3   ;;  %561 = vperm.xlu0 %1427, %v1665_v8  }
  0x89   :  { %397 = vperm.xlu1 %1420, %v1661_v6   ;;  %1430 = vset.pattern.permute.xlu0 %v1564_v19 }
  0x8a   :  { %593 = vperm.xlu0 %1430, %v1653_v3  }
  0x8d   :  { %1421 = vset.pattern.permute.xlu1 %v1560_v15 }
  0x8e   :  { %429 = vperm.xlu1 %1421, %v1649_v2   ;;  %1431 = vset.pattern.permute.xlu0 %v1565_v20 }
  0x8f   :  { %629 = vperm.xlu0 %1431, %v1649_v2  }
  0x92   :  { %437 = vperm.xlu1 %1421, %v1661_v6  }
  0x93   :  { %641 = vperm.xlu0 %1431, %v1665_v8  }
  0x96   :  { %441 = vperm.xlu1 %1421, %v1665_v8  }
  0x97   :  { %1434 = vset.pattern.permute.xlu0 %v1566_v21 }
  0x98   :  { %673 = vperm.xlu0 %1434, %v1653_v3  }
  0x9a   :  { %1424 = vset.pattern.permute.xlu1 %v1561_v16 }
  0x9b   :  { %473 = vperm.xlu1 %1424, %v1653_v3  }
  0x9c   :  { %1435 = vset.pattern.permute.xlu0 %v1567_v23 }
  0x9d   :  { %709 = vperm.xlu0 %1435, %v1649_v2  }
  0x9f   :  { %477 = vperm.xlu1 %1424, %v1661_v6  }
  0xa1   :  { %721 = vperm.xlu0 %1435, %v1665_v8  }
  0xa3   :  { %1425 = vset.pattern.permute.xlu1 %v1562_v17 }
  0xa4   :  { %509 = vperm.xlu1 %1425, %v1649_v2  }
  0xa5   :  { %1438 = vset.pattern.permute.xlu0 %v1568_v28 }
  0xa6   :  { %753 = vperm.xlu0 %1438, %v1653_v3  }
  0xa7   :  { %v76_v33 = vpop.permute.xlu1 %75  ;;  %v44_v34 = vpop.permute.xlu0 %43 }
  0xa8   :  { %517 = vperm.xlu1 %1425, %v1661_v6   ;;  %v70_v43 = vmul.f32 %v1739_v36, %v44_v34  ;;  %v71_v44 = vmul.f32 %v1742_v37, %v44_v34 }
  0xaa   :  { %1439 = vset.pattern.permute.xlu0 %v1569_v40  ;;  %v82_v50 = vadd.f32 %v76_v33, %v70_v43  ;;  %v83_v51 = vadd.f32 %v76_v33, %v71_v44  ;;  %v1575_v40 = vmov 37  }
  0xab   :  { %v1746_v41 = vpop.permute.xlu1 %79  ;;  %v1748_v42 = vpop.permute.xlu0 %48  ;;  %799 = vperm.xlu0 %1439, %v1735_v35  }
  0xac   :  { %521 = vperm.xlu1 %1425, %v1665_v8  }
  0xaf   :  { %1442 = vset.pattern.permute.xlu0 %v1570_v47 }
  0xb0   :  { %1428 = vset.pattern.permute.xlu1 %v1563_v18  ;;  %v1760_v48 = vpop.permute.xlu1 %91  ;;  %v88_v49 = vpop.permute.xlu0 %87  ;;  %835 = vperm.xlu0 %1442, %v1735_v35  }
  0xb1   :  { %v112_v52 = vmul.f32 %v1755_v45, %v88_v49  ;;  %v113_v53 = vmul.f32 %v1758_v46, %v88_v49  ;;  %553 = vperm.xlu1 %1428, %v1653_v3  }
  0xb3   :  { %v116_v54 = vadd.f32 %v112_v52, %v82_v50  ;;  %v117_v55 = vadd.f32 %v113_v53, %v83_v51  ;;  %v1576_v51 = vmov 40  }
  0xb4   :  { %1445 = vset.pattern.permute.xlu0 %v1571_v56 }
  0xb5   :  { %v1766_v57 = vmax.f32 %v116_v54, 0.0  ;;  %v1768_v58 = vmax.f32 %v117_v55, 0.0  ;;  %557 = vperm.xlu1 %1428, %v1661_v6   ;;  %v1771_v59 = vpop.permute.xlu1 %130  ;;  %v136_v60 = vpop.permute.xlu0 %135  ;;  %883 = vperm.xlu0 %1445, %v1735_v35   ;;  %v1577_v55 = vmov 43  }
  0xb7   :  { %v1776_v61 = vrot.slane %v1766_v57, %v1719_v25  ;;  %v1780_v62 = vrot.slane %v1768_v58, %v1719_v25  ;;  %v1798_v16 = vrot.slane %v1766_v57, %v1729_v31  ;;  %v1802_v17 = vrot.slane %v1768_v58, %v1729_v31 }
  0xb8   :  { %v1816_v43 = vrot.slane %v1766_v57, %v1722_v26  ;;  %v1820_v44 = vrot.slane %v1768_v58, %v1722_v26 }
  0xb9   :  { %v158_v63 = vmul.f32 %v1776_v61, %v136_v60  ;;  %v159_v0 = vmul.f32 %v1780_v62, %v136_v60  ;;  %1429 = vset.pattern.permute.xlu1 %v1564_v19  ;;  %v1785_v1 = vpop.permute.xlu1 %140  ;;  %1448 = vset.pattern.permute.xlu0 %v1572_v5 }
  0xba   :  { %589 = vperm.xlu1 %1429, %v1649_v2   ;;  %v1788_v4 = vpop.permute.xlu0 %165  ;;  %931 = vperm.xlu0 %1448, %v1735_v35  }
  0xbd   :  { %v146_v7 = vpop.permute.xlu1 %145 }
  0xbe   :  { %v162_v9 = vmul.f32 %v1776_v61, %v146_v7  ;;  %v163_v10 = vmul.f32 %v1780_v62, %v146_v7  ;;  %597 = vperm.xlu1 %1429, %v1661_v6   ;;  %v178_v11 = vpop.permute.xlu0 %177  ;;  %1451 = vset.pattern.permute.xlu0 %v1573_v12  ;;  %v1843_v7 = vrot.slane %v1766_v57, %v1732_v32 }
  0xbf   :  { %979 = vperm.xlu0 %1451, %v1735_v35  }
  0xc0   :  { %v186_v13 = vadd.f32 %v178_v11, %v162_v9  ;;  %v187_v14 = vadd.f32 %v178_v11, %v163_v10  ;;  %v1847_v9 = vrot.slane %v1768_v58, %v1732_v32 }
  0xc2   :  { %601 = vperm.xlu1 %1429, %v1665_v8   ;;  %v170_v15 = vpop.permute.xlu1 %169 }
  0xc3   :  { %v182_v18 = vadd.f32 %v170_v15, %v158_v63  ;;  %v183_v19 = vadd.f32 %v170_v15, %v159_v0  ;;  %v194_v22 = vpop.permute.xlu0 %193  ;;  %1454 = vset.pattern.permute.xlu0 %v1574_v30  ;;  %v1578_v15 = vmov 46  }
  0xc4   :  { %v214_v27 = vmul.f32 %v1798_v16, %v194_v22  ;;  %v215_v29 = vmul.f32 %v1802_v17, %v194_v22  ;;  %1027 = vperm.xlu0 %1454, %v1735_v35  }
  0xc6   :  { %v222_v33 = vadd.f32 %v214_v27, %v182_v18  ;;  %v223_v34 = vadd.f32 %v215_v29, %v183_v19  ;;  %1432 = vset.pattern.permute.xlu1 %v1565_v20  ;;  %v1808_v38 = vpop.permute.xlu1 %173 }
  0xc7   :  { %633 = vperm.xlu1 %1432, %v1653_v3  }
  0xc8   :  { %v1811_v39 = vpop.permute.xlu0 %229  ;;  %1457 = vset.pattern.permute.xlu0 %v1575_v40 }
  0xc9   :  { %1075 = vperm.xlu0 %1457, %v1735_v35  }
  0xcb   :  { %637 = vperm.xlu1 %1432, %v1661_v6   ;;  %v1823_v20 = vpop.permute.xlu1 %189 }
  0xcc   :  { %v242_v47 = vpop.permute.xlu0 %241 }
  0xcd   :  { %v258_v49 = vmul.f32 %v1816_v43, %v242_v47  ;;  %v259_v50 = vmul.f32 %v1820_v44, %v242_v47  ;;  %1460 = vset.pattern.permute.xlu0 %v1576_v51 }
  0xce   :  { %1123 = vperm.xlu0 %1460, %v1735_v35  }
  0xcf   :  { %1433 = vset.pattern.permute.xlu1 %v1566_v21  ;;  %v1828_v52 = vpop.permute.xlu1 %197  ;;  %v1837_v21 = vsub.s32 4, %v1714_v24 }
  0xd0   :  { %669 = vperm.xlu1 %1433, %v1649_v2  }
  0xd1   :  { %v274_v53 = vpop.permute.xlu0 %273 }
  0xd2   :  { %1463 = vset.pattern.permute.xlu0 %v1577_v55  ;;  %v294_v22 = vmul.f32 %v1843_v7, %v274_v53  ;;  %v295_v27 = vmul.f32 %v1847_v9, %v274_v53  ;;  %v1579_v55 = vmov 49   ;;  %v2235_v53 = vmov 51  }
  0xd3   :  { %v202_v54 = vpop.permute.xlu1 %201  ;;  %1171 = vperm.xlu0 %1463, %v1735_v35  }
  0xd4   :  { %v218_v56 = vmul.f32 %v1798_v16, %v202_v54  ;;  %v219_v60 = vmul.f32 %v1802_v17, %v202_v54  ;;  %677 = vperm.xlu1 %1433, %v1661_v6  }
  0xd6   :  { %v226_v63 = vadd.f32 %v218_v56, %v186_v13  ;;  %v227_v0 = vadd.f32 %v219_v60, %v187_v14  ;;  %v1839_v5 = vpop.permute.xlu0 %309  ;;  %v1852_v13 = vrot.slane %v1766_v57, %v1837_v21  ;;  %v1856_v14 = vrot.slane %v1768_v58, %v1837_v21 }
  0xd7   :  { %1466 = vset.pattern.permute.xlu0 %v1578_v15  ;;  %v72_v60 = vmul.f32 %v1739_v36, %v1748_v42  ;;  %v115_v15 = vmul.f32 %v1758_v46, %v1760_v48 }
  0xd8   :  { %681 = vperm.xlu1 %1433, %v1665_v8   ;;  %v234_v10 = vpop.permute.xlu1 %233  ;;  %v266_v11 = vadd.f32 %v258_v49, %v226_v63  ;;  %v267_v12 = vadd.f32 %v259_v50, %v227_v0  ;;  %1219 = vperm.xlu0 %1466, %v1735_v35   ;;  %v73_v63 = vmul.f32 %v1742_v37, %v1748_v42 }
  0xd9   :  { %v254_v18 = vmul.f32 %v1816_v43, %v234_v10  ;;  %v255_v19 = vmul.f32 %v1820_v44, %v234_v10  ;;  %v84_v42 = vadd.f32 %v1746_v41, %v72_v60 }
  0xda   :  { %v322_v29 = vpop.permute.xlu0 %321 }
  0xdb   :  { %v262_v30 = vadd.f32 %v254_v18, %v222_v33  ;;  %v263_v40 = vadd.f32 %v255_v19, %v223_v34  ;;  %v338_v47 = vmul.f32 %v1852_v13, %v322_v29  ;;  %v339_v49 = vmul.f32 %v1856_v14, %v322_v29 }
  0xdc   :  { %1436 = vset.pattern.permute.xlu1 %v1567_v23  ;;  %v1866_v50 = vpop.permute.xlu1 %237  ;;  %1469 = vset.pattern.permute.xlu0 %v1579_v55  ;;  %v1874_v34 = vsub.s32 6, %v1714_v24  ;;  %v85_v19 = vadd.f32 %v1746_v41, %v73_v63 }
  0xdd   :  { %713 = vperm.xlu1 %1436, %v1653_v3   ;;  %v302_v51 = vadd.f32 %v294_v22, %v262_v30  ;;  %v303_v54 = vadd.f32 %v295_v27, %v263_v40  ;;  %1267 = vperm.xlu0 %1469, %v1735_v35  }
  0xde   :  { %v1887_v0 = vrot.slane %v1766_v57, %v1874_v34  ;;  %v1891_v10 = vrot.slane %v1768_v58, %v1874_v34 }
  0xdf   :  { %v354_v56 = vpop.permute.xlu0 %353 }
  0xe1   :  { %717 = vperm.xlu1 %1436, %v1661_v6   ;;  %v1871_v33 = vpop.permute.xlu1 %269  ;;  %1472 = vset.pattern.permute.xlu0 %v2235_v53  ;;  %v1583_v53 = vmov 23  }
  0xe4   :  { %v1877_v23 = vpop.permute.xlu0 %389 }
  0xe5   :  { %1437 = vset.pattern.permute.xlu1 %v1568_v28  ;;  %v278_v3 = vpop.permute.xlu1 %277  ;;  %v114_v28 = vmul.f32 %v1755_v45, %v1760_v48  ;;  %v1909_v45 = vsub.s32 5, %v1714_v24  ;;  %v119_v48 = vadd.f32 %v115_v15, %v85_v19  ;;  %v216_v15 = vmul.f32 %v1798_v16, %v1828_v52 }
  0xe6   :  { %749 = vperm.xlu1 %1437, %v1649_v2  }
  0xe7   :  { %v118_v46 = vadd.f32 %v114_v28, %v84_v42  ;;  %v217_v42 = vmul.f32 %v1802_v17, %v1828_v52  ;;  %v257_v52 = vmul.f32 %v1820_v44, %v1866_v50 }
  0xe8   :  { %v402_v36 = vpop.permute.xlu0 %401 }
  0xe9   :  { %v1898_v18 = vmul.f32 %v1887_v0, %v402_v36  ;;  %v1901_v2 = vmul.f32 %v1891_v10, %v402_v36  ;;  %v282_v37 = vpop.permute.xlu1 %281  ;;  %v1920_v36 = vmax.f32 %v118_v46, 0.0 }
  0xea   :  { %v298_v22 = vmul.f32 %v1843_v7, %v282_v37  ;;  %v299_v27 = vmul.f32 %v1847_v9, %v282_v37  ;;  %757 = vperm.xlu1 %1437, %v1661_v6   ;;  %v1922_v37 = vmax.f32 %v119_v48, 0.0 }
  0xec   :  { %v306_v29 = vadd.f32 %v298_v22, %v266_v11  ;;  %v307_v30 = vadd.f32 %v299_v27, %v267_v12  ;;  %v1926_v11 = vrot.slane %v1766_v57, %v1909_v45  ;;  %v160_v12 = vmul.f32 %v1776_v61, %v1785_v1 }
  0xed   :  { %v1911_v40 = vpop.permute.xlu0 %433  ;;  %v1581_v27 = vmov 52  }
  0xee   :  { %761 = vperm.xlu1 %1437, %v1665_v8   ;;  %v314_v55 = vpop.permute.xlu1 %313  ;;  %v1914_v60 = vadd.f32 %v338_v47, %v306_v29  ;;  %v1916_v41 = vadd.f32 %v339_v49, %v307_v30  ;;  %v1930_v8 = vrot.slane %v1768_v58, %v1909_v45  ;;  %v161_v47 = vmul.f32 %v1780_v62, %v1785_v1 }
  0xef   :  { %v334_v63 = vmul.f32 %v1852_v13, %v314_v55  ;;  %v335_v6 = vmul.f32 %v1856_v14, %v314_v55  ;;  %v374_v19 = vmul.f32 %v1926_v11, %v354_v56  ;;  %v184_v29 = vadd.f32 %v1808_v38, %v160_v12 }
  0xf0   :  { %v375_v22 = vmul.f32 %v1930_v8, %v354_v56  ;;  %v185_v1 = vadd.f32 %v1808_v38, %v161_v47  ;;  %v1957_v30 = vrot.slane %v1920_v36, %v1719_v25  ;;  %v1961_v55 = vrot.slane %v1922_v37, %v1719_v25 }
  0xf1   :  { %v342_v49 = vadd.f32 %v334_v63, %v302_v51  ;;  %v343_v28 = vadd.f32 %v335_v6, %v303_v54  ;;  %v256_v51 = vmul.f32 %v1816_v43, %v1866_v50  ;;  %v224_v38 = vadd.f32 %v216_v15, %v184_v29 }
  0xf2   :  { %1440 = vset.pattern.permute.xlu1 %v1581_v27  ;;  %v318_v46 = vpop.permute.xlu1 %317  ;;  %v1942_v48 = vpop.permute.xlu0 %469  ;;  %v225_v63 = vadd.f32 %v217_v42, %v185_v1  ;;  %v296_v6 = vmul.f32 %v1843_v7, %v278_v3  ;;  %v297_v12 = vmul.f32 %v1847_v9, %v278_v3  ;;  %v156_v50 = vmul.f32 %v1776_v61, %v1771_v59 }
  0xf3   :  { %813 = vperm.xlu1 %1440, %v1735_v35   ;;  %v1951_v54 = vadd.f32 %v374_v19, %v342_v49  ;;  %v1953_v56 = vadd.f32 %v375_v22, %v343_v28  ;;  %v157_v49 = vmul.f32 %v1780_v62, %v1771_v59  ;;  %v1582_v22 = vmov 21  }
  0xf4   :  { %v264_v42 = vadd.f32 %v256_v51, %v224_v38  ;;  %v265_v27 = vadd.f32 %v257_v52, %v225_v63  ;;  %v336_v3 = vmul.f32 %v1852_v13, %v318_v46  ;;  %v337_v29 = vmul.f32 %v1856_v14, %v318_v46 }
  0xf5   :  { %v212_v59 = vmul.f32 %v1798_v16, %v1823_v20  ;;  %v213_v61 = vmul.f32 %v1802_v17, %v1823_v20 }
  0xf6   :  { %v482_v47 = vpop.permute.xlu0 %481  ;;  %v304_v62 = vadd.f32 %v296_v6, %v264_v42  ;;  %v305_v1 = vadd.f32 %v297_v12, %v265_v27  ;;  %v252_v6 = vmul.f32 %v1816_v43, %v1811_v39  ;;  %v1998_v27 = vsub.s32 7, %v1714_v24 }
  0xf7   :  { %v1970_v28 = vmul.f32 %v1957_v30, %v482_v47  ;;  %v1973_v19 = vmul.f32 %v1961_v55, %v482_v47  ;;  %1441 = vset.pattern.permute.xlu1 %v1582_v22  ;;  %v350_v15 = vpop.permute.xlu1 %349  ;;  %v180_v47 = vadd.f32 %v1788_v4, %v156_v50  ;;  %v181_v22 = vadd.f32 %v1788_v4, %v157_v49 }
  0xf8   :  { %819 = vperm.xlu1 %1441, %v1735_v35   ;;  %v344_v52 = vadd.f32 %v336_v3, %v304_v62  ;;  %v345_v38 = vadd.f32 %v337_v29, %v305_v1  ;;  %v253_v4 = vmul.f32 %v1820_v44, %v1811_v39  ;;  %v292_v50 = vmul.f32 %v1843_v7, %v1871_v33 }
  0xf9   :  { %v220_v16 = vadd.f32 %v212_v59, %v180_v47  ;;  %v221_v25 = vadd.f32 %v213_v61, %v181_v22  ;;  %v293_v49 = vmul.f32 %v1847_v9, %v1871_v33  ;;  %v1584_v3 = vmov 24  }
  0xfa   :  { %v447_v24 = vrot.slane %v1766_v57, %v1998_v27  ;;  %v451_v62 = vrot.slane %v1768_v58, %v1998_v27  ;;  %v333_v1 = vmul.f32 %v1856_v14, %v1839_v5  ;;  %v1585_v47 = vmov 26  }
  0xfb   :  { %v358_v51 = vpop.permute.xlu1 %357  ;;  %v260_v43 = vadd.f32 %v252_v6, %v220_v16  ;;  %v261_v29 = vadd.f32 %v253_v4, %v221_v25 }
  0xfc   :  { %v376_v63 = vmul.f32 %v1926_v11, %v358_v51  ;;  %v377_v46 = vmul.f32 %v1930_v8, %v358_v51  ;;  %1443 = vset.pattern.permute.xlu1 %v1583_v53  ;;  %v454_v57 = vmul.f32 %v447_v24, %v1911_v40  ;;  %v455_v58 = vmul.f32 %v451_v62, %v1911_v40 }
  0xfd   :  { %851 = vperm.xlu1 %1443, %v1735_v35   ;;  %v300_v7 = vadd.f32 %v292_v50, %v260_v43  ;;  %v301_v59 = vadd.f32 %v293_v49, %v261_v29  ;;  %v1586_v40 = vmov 27  }
  0xfe   :  { %v384_v17 = vadd.f32 %v376_v63, %v344_v52  ;;  %v385_v20 = vadd.f32 %v377_v46, %v345_v38 }
  0xff   :  { %v362_v12 = vpop.permute.xlu1 %361  ;;  %v341_v52 = vadd.f32 %v333_v1, %v301_v59  ;;  %v1589_v1 = vmov 32  }
 0x100   :  { %v378_v53 = vmul.f32 %v1926_v11, %v362_v12  ;;  %v379_v42 = vmul.f32 %v1930_v8, %v362_v12 }
 0x101   :  { %1444 = vset.pattern.permute.xlu1 %v1584_v3  ;;  %v1587_v3 = vmov 29  }
 0x102   :  { %v386_v39 = vadd.f32 %v378_v53, %v1914_v60  ;;  %v387_v44 = vadd.f32 %v379_v42, %v1916_v41  ;;  %867 = vperm.xlu1 %1444, %v1735_v35   ;;  %v332_v41 = vmul.f32 %v1852_v13, %v1839_v5  ;;  %v492_v53 = vmul.f32 %v1957_v30, %v1942_v48 }
 0x104   :  { %v394_v9 = vpop.permute.xlu1 %393  ;;  %v426_v33 = vadd.f32 %v1898_v18, %v386_v39  ;;  %v427_v61 = vadd.f32 %v1901_v2, %v387_v44  ;;  %v372_v18 = vmul.f32 %v1926_v11, %v350_v15  ;;  %v373_v2 = vmul.f32 %v1930_v8, %v350_v15 }
 0x105   :  { %v414_v25 = vmul.f32 %v1887_v0, %v394_v9  ;;  %v415_v60 = vmul.f32 %v1891_v10, %v394_v9  ;;  %v340_v13 = vadd.f32 %v332_v41, %v300_v7  ;;  %v1588_v7 = vmov 30   ;;  %v514_v41 = vpop.permute.xlu0 %513 }
 0x106   :  { %1446 = vset.pattern.permute.xlu1 %v1585_v47  ;;  %v381_v63 = vadd.f32 %v373_v2, %v341_v52  ;;  %v1590_v52 = vmov 33  }
 0x107   :  { %v422_v22 = vadd.f32 %v414_v25, %v1951_v54  ;;  %v423_v51 = vadd.f32 %v415_v60, %v1953_v56  ;;  %899 = vperm.xlu1 %1446, %v1735_v35   ;;  %v380_v15 = vadd.f32 %v372_v18, %v340_v13  ;;  %v412_v54 = vmul.f32 %v1887_v0, %v1877_v23 }
 0x108   :  { %v398_v38 = vpop.permute.xlu1 %397  ;;  %v413_v56 = vmul.f32 %v1891_v10, %v1877_v23 }
 0x109   :  { %v416_v5 = vmul.f32 %v1887_v0, %v398_v38  ;;  %v417_v14 = vmul.f32 %v1891_v10, %v398_v38  ;;  %v462_v11 = vadd.f32 %v454_v57, %v422_v22  ;;  %v463_v8 = vadd.f32 %v455_v58, %v423_v51 }
 0x10a   :  { %v420_v4 = vadd.f32 %v412_v54, %v380_v15  ;;  %v421_v12 = vadd.f32 %v413_v56, %v381_v63  ;;  %v527_v57 = vrot.slane %v1920_v36, %v1729_v31  ;;  %v531_v58 = vrot.slane %v1922_v37, %v1729_v31  ;;  %v550_v63 = vpop.permute.xlu0 %549 }
 0x10b   :  { %v424_v46 = vadd.f32 %v416_v5, %v384_v17  ;;  %v425_v16 = vadd.f32 %v417_v14, %v385_v20  ;;  %1447 = vset.pattern.permute.xlu1 %v1586_v40  ;;  %v493_v17 = vmul.f32 %v1961_v55, %v1942_v48  ;;  %v1591_v40 = vmov 35  }
 0x10c   :  { %915 = vperm.xlu1 %1447, %v1735_v35  }
 0x10d   :  { %v430_v6 = vpop.permute.xlu1 %429 }
 0x10e   :  { %v452_v50 = vmul.f32 %v447_v24, %v430_v6  ;;  %v453_v49 = vmul.f32 %v451_v62, %v430_v6 }
 0x110   :  { %v460_v20 = vadd.f32 %v452_v50, %v420_v4  ;;  %v461_v42 = vadd.f32 %v453_v49, %v421_v12  ;;  %1449 = vset.pattern.permute.xlu1 %v1587_v3 }
 0x111   :  { %947 = vperm.xlu1 %1449, %v1735_v35   ;;  %v438_v23 = vpop.permute.xlu1 %437 }
 0x112   :  { %v456_v0 = vmul.f32 %v447_v24, %v438_v23  ;;  %v457_v10 = vmul.f32 %v451_v62, %v438_v23  ;;  %v500_v43 = vadd.f32 %v492_v53, %v460_v20  ;;  %v501_v29 = vadd.f32 %v493_v17, %v461_v42  ;;  %v562_v20 = vpop.permute.xlu0 %561 }
 0x113   :  { %v1592_v17 = vmov 36  }
 0x114   :  { %v464_v39 = vadd.f32 %v456_v0, %v424_v46  ;;  %v465_v44 = vadd.f32 %v457_v10, %v425_v16  ;;  %v567_v16 = vrot.slane %v1920_v36, %v1722_v26 }
 0x115   :  { %1450 = vset.pattern.permute.xlu1 %v1588_v7  ;;  %v442_v59 = vpop.permute.xlu1 %441 }
 0x116   :  { %v458_v9 = vmul.f32 %v447_v24, %v442_v59  ;;  %v459_v25 = vmul.f32 %v451_v62, %v442_v59  ;;  %963 = vperm.xlu1 %1450, %v1735_v35   ;;  %v594_v59 = vpop.permute.xlu0 %593 }
 0x118   :  { %v466_v48 = vadd.f32 %v458_v9, %v426_v33  ;;  %v467_v60 = vadd.f32 %v459_v25, %v427_v61  ;;  %v534_v33 = vmul.f32 %v527_v57, %v514_v41  ;;  %v535_v61 = vmul.f32 %v531_v58, %v514_v41 }
 0x119   :  { %v611_v41 = vrot.slane %v1922_v37, %v1732_v32 }
 0x11a   :  { %1452 = vset.pattern.permute.xlu1 %v1589_v1  ;;  %v474_v18 = vpop.permute.xlu1 %473  ;;  %v506_v2 = vadd.f32 %v1970_v28, %v466_v48  ;;  %v507_v47 = vadd.f32 %v1973_v19, %v467_v60  ;;  %v607_v60 = vrot.slane %v1920_v36, %v1732_v32 }
 0x11b   :  { %v494_v24 = vmul.f32 %v1957_v30, %v474_v18  ;;  %v495_v62 = vmul.f32 %v1961_v55, %v474_v18  ;;  %995 = vperm.xlu1 %1452, %v1735_v35  }
 0x11d   :  { %v502_v22 = vadd.f32 %v494_v24, %v462_v11  ;;  %v503_v51 = vadd.f32 %v495_v62, %v463_v8  ;;  %v571_v11 = vrot.slane %v1922_v37, %v1722_v26  ;;  %v1594_v24 = vmov 39  }
 0x11e   :  { %v478_v13 = vpop.permute.xlu1 %477 }
 0x11f   :  { %v496_v28 = vmul.f32 %v1957_v30, %v478_v13  ;;  %v497_v19 = vmul.f32 %v1961_v55, %v478_v13  ;;  %1453 = vset.pattern.permute.xlu1 %v1590_v52  ;;  %v542_v38 = vadd.f32 %v534_v33, %v502_v22  ;;  %v543_v5 = vadd.f32 %v535_v61, %v503_v51  ;;  %v630_v52 = vpop.permute.xlu0 %629 }
 0x120   :  { %1011 = vperm.xlu1 %1453, %v1735_v35   ;;  %v572_v55 = vmul.f32 %v567_v16, %v550_v63  ;;  %v573_v54 = vmul.f32 %v571_v11, %v550_v63 }
 0x121   :  { %v504_v14 = vadd.f32 %v496_v28, %v464_v39  ;;  %v505_v15 = vadd.f32 %v497_v19, %v465_v44  ;;  %v578_v39 = vmul.f32 %v567_v16, %v562_v20  ;;  %v579_v44 = vmul.f32 %v571_v11, %v562_v20 }
 0x122   :  { %v1595_v19 = vmov 41  }
 0x123   :  { %v510_v46 = vpop.permute.xlu1 %509 }
 0x124   :  { %v532_v8 = vmul.f32 %v527_v57, %v510_v46  ;;  %v533_v30 = vmul.f32 %v531_v58, %v510_v46  ;;  %1455 = vset.pattern.permute.xlu1 %v1591_v40 }
 0x125   :  { %1043 = vperm.xlu1 %1455, %v1735_v35  }
 0x126   :  { %v540_v56 = vadd.f32 %v532_v8, %v500_v43  ;;  %v541_v6 = vadd.f32 %v533_v30, %v501_v29  ;;  %v1593_v29 = vmov 38   ;;  %v1596_v30 = vmov 42  }
 0x127   :  { %v518_v4 = vpop.permute.xlu1 %517 }
 0x128   :  { %v536_v12 = vmul.f32 %v527_v57, %v518_v4  ;;  %v537_v50 = vmul.f32 %v531_v58, %v518_v4  ;;  %v580_v49 = vadd.f32 %v572_v55, %v540_v56  ;;  %v581_v53 = vadd.f32 %v573_v54, %v541_v6  ;;  %v642_v4 = vpop.permute.xlu0 %641 }
 0x129   :  { %1456 = vset.pattern.permute.xlu1 %v1592_v17 }
 0x12a   :  { %v544_v42 = vadd.f32 %v536_v12, %v504_v14  ;;  %v545_v3 = vadd.f32 %v537_v50, %v505_v15  ;;  %1059 = vperm.xlu1 %1456, %v1735_v35   ;;  %v647_v14 = vrot.slane %v1920_v36, %v1837_v21 }
 0x12b   :  { %v522_v23 = vpop.permute.xlu1 %521 }
 0x12c   :  { %v538_v0 = vmul.f32 %v527_v57, %v522_v23  ;;  %v539_v10 = vmul.f32 %v531_v58, %v522_v23  ;;  %v614_v57 = vmul.f32 %v607_v60, %v594_v59  ;;  %v615_v58 = vmul.f32 %v611_v41, %v594_v59 }
 0x12d   :  { %v652_v46 = vmul.f32 %v647_v14, %v630_v52 }
 0x12e   :  { %v546_v7 = vadd.f32 %v538_v0, %v506_v2  ;;  %v547_v43 = vadd.f32 %v539_v10, %v507_v47  ;;  %1458 = vset.pattern.permute.xlu1 %v1593_v29  ;;  %v674_v10 = vpop.permute.xlu0 %673  ;;  %v691_v29 = vrot.slane %v1922_v37, %v1909_v45 }
 0x12f   :  { %1091 = vperm.xlu1 %1458, %v1735_v35  }
 0x130   :  { %v554_v9 = vpop.permute.xlu1 %553  ;;  %v586_v25 = vadd.f32 %v578_v39, %v546_v7  ;;  %v587_v48 = vadd.f32 %v579_v44, %v547_v43  ;;  %v687_v43 = vrot.slane %v1920_v36, %v1909_v45 }
 0x131   :  { %v574_v1 = vmul.f32 %v567_v16, %v554_v9  ;;  %v575_v18 = vmul.f32 %v571_v11, %v554_v9 }
 0x133   :  { %v582_v2 = vadd.f32 %v574_v1, %v542_v38  ;;  %v583_v47 = vadd.f32 %v575_v18, %v543_v5  ;;  %1459 = vset.pattern.permute.xlu1 %v1594_v24  ;;  %v651_v5 = vrot.slane %v1922_v37, %v1837_v21  ;;  %v695_v1 = vmul.f32 %v691_v29, %v674_v10 }
 0x134   :  { %1107 = vperm.xlu1 %1459, %v1735_v35   ;;  %v558_v62 = vpop.permute.xlu1 %557  ;;  %v1599_v24 = vmov 47  }
 0x135   :  { %v576_v33 = vmul.f32 %v567_v16, %v558_v62  ;;  %v577_v61 = vmul.f32 %v571_v11, %v558_v62  ;;  %v622_v22 = vadd.f32 %v614_v57, %v582_v2  ;;  %v623_v51 = vadd.f32 %v615_v58, %v583_v47 }
 0x136   :  { %v653_v16 = vmul.f32 %v651_v5, %v630_v52  ;;  %v1600_v52 = vmov 48  }
 0x137   :  { %v584_v13 = vadd.f32 %v576_v33, %v544_v42  ;;  %v585_v28 = vadd.f32 %v577_v61, %v545_v3  ;;  %v1597_v3 = vmov 44   ;;  %v710_v61 = vpop.permute.xlu0 %709 }
 0x138   :  { %1461 = vset.pattern.permute.xlu1 %v1595_v19 }
 0x139   :  { %1139 = vperm.xlu1 %1461, %v1735_v35   ;;  %v590_v38 = vpop.permute.xlu1 %589 }
 0x13a   :  { %v612_v15 = vmul.f32 %v607_v60, %v590_v38  ;;  %v613_v63 = vmul.f32 %v611_v41, %v590_v38 }
 0x13c   :  { %v620_v11 = vadd.f32 %v612_v15, %v580_v49  ;;  %v621_v8 = vadd.f32 %v613_v63, %v581_v53  ;;  %v658_v49 = vmul.f32 %v647_v14, %v642_v4  ;;  %v659_v53 = vmul.f32 %v651_v5, %v642_v4 }
 0x13d   :  { %1462 = vset.pattern.permute.xlu1 %v1596_v30  ;;  %v598_v40 = vpop.permute.xlu1 %597  ;;  %v722_v30 = vpop.permute.xlu0 %721 }
 0x13e   :  { %v616_v55 = vmul.f32 %v607_v60, %v598_v40  ;;  %v617_v54 = vmul.f32 %v611_v41, %v598_v40  ;;  %1155 = vperm.xlu1 %1462, %v1735_v35   ;;  %v660_v56 = vadd.f32 %v652_v46, %v620_v11  ;;  %v661_v6 = vadd.f32 %v653_v16, %v621_v8 }
 0x140   :  { %v624_v12 = vadd.f32 %v616_v55, %v584_v13  ;;  %v625_v50 = vadd.f32 %v617_v54, %v585_v28  ;;  %v727_v28 = vrot.slane %v1920_v36, %v1874_v34  ;;  %v1601_v54 = vmov 50  }
 0x141   :  { %v602_v17 = vpop.permute.xlu1 %601 }
 0x142   :  { %v618_v20 = vmul.f32 %v607_v60, %v602_v17  ;;  %v619_v42 = vmul.f32 %v611_v41, %v602_v17  ;;  %1464 = vset.pattern.permute.xlu1 %v1597_v3  ;;  %v1598_v60 = vmov 45   ;;  %v694_v41 = vmul.f32 %v687_v43, %v674_v10  ;;  %v754_v3 = vpop.permute.xlu0 %753 }
 0x143   :  { %1187 = vperm.xlu1 %1464, %v1735_v35   ;;  %v738_v17 = vmul.f32 %v727_v28, %v722_v30  ;;  %v771_v10 = vrot.slane %v1922_v37, %v1998_v27 }
 0x144   :  { %v626_v23 = vadd.f32 %v618_v20, %v586_v25  ;;  %v627_v0 = vadd.f32 %v619_v42, %v587_v48  ;;  %v2239_v42 = vmov 51  }
 0x146   :  { %v634_v39 = vpop.permute.xlu1 %633  ;;  %v666_v44 = vadd.f32 %v658_v49, %v626_v23  ;;  %v667_v7 = vadd.f32 %v659_v53, %v627_v0  ;;  %v767_v0 = vrot.slane %v1920_v36, %v1998_v27 }
 0x147   :  { %v654_v59 = vmul.f32 %v647_v14, %v634_v39  ;;  %v655_v9 = vmul.f32 %v651_v5, %v634_v39  ;;  %1465 = vset.pattern.permute.xlu1 %v1598_v60 }
 0x148   :  { %1203 = vperm.xlu1 %1465, %v1735_v35  }
 0x149   :  { %v662_v25 = vadd.f32 %v654_v59, %v622_v22  ;;  %v663_v48 = vadd.f32 %v655_v9, %v623_v51  ;;  %v731_v22 = vrot.slane %v1922_v37, %v1874_v34  ;;  %v775_v59 = vmul.f32 %v771_v10, %v754_v3 }
 0x14a   :  { %v638_v18 = vpop.permute.xlu1 %637 }
 0x14b   :  { %v656_v57 = vmul.f32 %v647_v14, %v638_v18  ;;  %v657_v58 = vmul.f32 %v651_v5, %v638_v18  ;;  %v702_v2 = vadd.f32 %v694_v41, %v662_v25  ;;  %v703_v47 = vadd.f32 %v695_v1, %v663_v48 }
 0x14c   :  { %1467 = vset.pattern.permute.xlu1 %v1599_v24  ;;  %v732_v14 = vmul.f32 %v727_v28, %v710_v61  ;;  %v733_v38 = vmul.f32 %v731_v22, %v710_v61 }
 0x14d   :  { %v664_v62 = vadd.f32 %v656_v57, %v624_v12  ;;  %v665_v33 = vadd.f32 %v657_v58, %v625_v50  ;;  %1235 = vperm.xlu1 %1467, %v1735_v35  }
 0x14f   :  { %v670_v13 = vpop.permute.xlu1 %669 }
 0x150   :  { %v692_v51 = vmul.f32 %v687_v43, %v670_v13  ;;  %v693_v19 = vmul.f32 %v691_v29, %v670_v13 }
 0x151   :  { %1468 = vset.pattern.permute.xlu1 %v1600_v52 }
 0x152   :  { %v700_v5 = vadd.f32 %v692_v51, %v660_v56  ;;  %v701_v15 = vadd.f32 %v693_v19, %v661_v6  ;;  %1251 = vperm.xlu1 %1468, %v1735_v35   ;;  %v739_v56 = vmul.f32 %v731_v22, %v722_v30 }
 0x153   :  { %v678_v63 = vpop.permute.xlu1 %677 }
 0x154   :  { %v696_v46 = vmul.f32 %v687_v43, %v678_v63  ;;  %v697_v16 = vmul.f32 %v691_v29, %v678_v63  ;;  %v740_v11 = vadd.f32 %v732_v14, %v700_v5  ;;  %v741_v8 = vadd.f32 %v733_v38, %v701_v15  ;;  %v2240_v38 = vld [vmem:[#allocation11_spill] sm:$0xff]  ;;  %v800_v63 = vpop.permute.xlu0 %799 }
 0x156   :  { %v704_v40 = vadd.f32 %v696_v46, %v664_v62  ;;  %v705_v55 = vadd.f32 %v697_v16, %v665_v33  ;;  %1470 = vset.pattern.permute.xlu1 %v1601_v54 }
 0x157   :  { %1283 = vperm.xlu1 %1470, %v1735_v35   ;;  %v682_v4 = vpop.permute.xlu1 %681 }
 0x158   :  { %v698_v12 = vmul.f32 %v687_v43, %v682_v4  ;;  %v699_v50 = vmul.f32 %v691_v29, %v682_v4  ;;  %v774_v29 = vmul.f32 %v767_v0, %v754_v3 }
 0x15a   :  { %v706_v6 = vadd.f32 %v698_v12, %v666_v44  ;;  %v707_v20 = vadd.f32 %v699_v50, %v667_v7 }
 0x15b   :  { %1471 = vset.pattern.permute.xlu1 %v2239_v42 }
 0x15c   :  { %1299 = vperm.xlu1 %1471, %v1735_v35   ;;  %v714_v49 = vpop.permute.xlu1 %713  ;;  %v746_v53 = vadd.f32 %v738_v17, %v706_v6  ;;  %v747_v23 = vadd.f32 %v739_v56, %v707_v20  ;;  %v836_v6 = vpop.permute.xlu0 %835 }
 0x15d   :  { %v734_v39 = vmul.f32 %v727_v28, %v714_v49  ;;  %v735_v43 = vmul.f32 %v731_v22, %v714_v49 }
 0x15f   :  { %v742_v44 = vadd.f32 %v734_v39, %v702_v2  ;;  %v743_v7 = vadd.f32 %v735_v43, %v703_v47 }
 0x160   :  { %v718_v9 = vpop.permute.xlu1 %717 }
 0x161   :  { %v782_v60 = vadd.f32 %v774_v29, %v742_v44  ;;  %v783_v41 = vadd.f32 %v775_v59, %v743_v7  ;;  %v736_v1 = vmul.f32 %v727_v28, %v718_v9  ;;  %v737_v35 = vmul.f32 %v731_v22, %v718_v9 }
 0x163   :  { %v744_v25 = vadd.f32 %v736_v1, %v704_v40  ;;  %v745_v48 = vadd.f32 %v737_v35, %v705_v55 }
 0x165   :  { %v750_v18 = vpop.permute.xlu1 %749 }
 0x166   :  { %v772_v57 = vmul.f32 %v767_v0, %v750_v18  ;;  %v773_v58 = vmul.f32 %v771_v10, %v750_v18 }
 0x168   :  { %v780_v36 = vadd.f32 %v772_v57, %v740_v11  ;;  %v781_v24 = vadd.f32 %v773_v58, %v741_v8  ;;  %v884_v57 = vpop.permute.xlu0 %883  ;;  %v2120_v58 = vmax.f32 %v782_v60, 0.0 }
 0x169   :  { %v758_v62 = vpop.permute.xlu1 %757 }
 0x16a   :  { %v776_v37 = vmul.f32 %v767_v0, %v758_v62  ;;  %v777_v33 = vmul.f32 %v771_v10, %v758_v62  ;;  %v2088_v47 = vmax.f32 %v780_v36, 0.0  ;;  %v2090_v51 = vmax.f32 %v781_v24, 0.0 }
 0x16b   :  { %v2122_v36 = vmax.f32 %v783_v41, 0.0  ;;  %v937_v41 = vrot.slane %v2120_v58, %v2240_v38 }
 0x16c   :  { %v2084_v61 = vadd.f32 %v776_v37, %v744_v25  ;;  %v2086_v13 = vadd.f32 %v777_v33, %v745_v48  ;;  %v805_v5 = vrot.slane %v2088_v47, %v2240_v38  ;;  %v809_v15 = vrot.slane %v2090_v51, %v2240_v38 }
 0x16d   :  { %v762_v2 = vpop.permute.xlu1 %761  ;;  %v825_v11 = vrot.slane %v2088_v47, %v1729_v31  ;;  %v829_v8 = vrot.slane %v2090_v51, %v1729_v31  ;;  %v841_v40 = vrot.slane %v2088_v47, %v1722_v26  ;;  %v845_v55 = vrot.slane %v2090_v51, %v1722_v26 }
 0x16e   :  { %v778_v28 = vmul.f32 %v767_v0, %v762_v2  ;;  %v779_v22 = vmul.f32 %v771_v10, %v762_v2  ;;  %v810_v46 = vmul.f32 %v805_v5, %v800_v63  ;;  %v811_v16 = vmul.f32 %v809_v15, %v800_v63 }
 0x16f   :  { %v846_v42 = vmul.f32 %v841_v40, %v836_v6  ;;  %v847_v3 = vmul.f32 %v845_v55, %v836_v6  ;;  %v857_v49 = vrot.slane %v2088_v47, %v1732_v32  ;;  %v873_v43 = vrot.slane %v2088_v47, %v1837_v21  ;;  %v932_v40 = vpop.permute.xlu0 %931 }
 0x170   :  { %v2092_v19 = vadd.f32 %v778_v28, %v746_v53  ;;  %v2094_v52 = vadd.f32 %v779_v22, %v747_v23  ;;  %v861_v53 = vrot.slane %v2090_v51, %v1732_v32  ;;  %v877_v29 = vrot.slane %v2090_v51, %v1837_v21 }
 0x171   :  { %v889_v44 = vrot.slane %v2088_v47, %v1909_v45  ;;  %v893_v7 = vrot.slane %v2090_v51, %v1909_v45  ;;  %v905_v33 = vrot.slane %v2088_v47, %v1874_v34  ;;  %v909_v2 = vrot.slane %v2090_v51, %v1874_v34 }
 0x172   :  { %v814_v14 = vpop.permute.xlu1 %813  ;;  %v921_v15 = vrot.slane %v2088_v47, %v1998_v27  ;;  %v925_v60 = vrot.slane %v2090_v51, %v1998_v27  ;;  %v941_v63 = vrot.slane %v2122_v36, %v2240_v38  ;;  %v953_v47 = vrot.slane %v2120_v58, %v1729_v31 }
 0x173   :  { %v816_v54 = vadd.f32 %v814_v14, %v810_v46  ;;  %v817_v4 = vadd.f32 %v814_v14, %v811_v16  ;;  %v894_v62 = vmul.f32 %v889_v44, %v884_v57  ;;  %v895_v37 = vmul.f32 %v893_v7, %v884_v57 }
 0x174   :  { %v957_v51 = vrot.slane %v2122_v36, %v1729_v31 }
 0x177   :  { %v820_v30 = vpop.permute.xlu1 %819 }
 0x178   :  { %v830_v12 = vmul.f32 %v825_v11, %v820_v30  ;;  %v831_v50 = vmul.f32 %v829_v8, %v820_v30 }
 0x17a   :  { %v832_v17 = vadd.f32 %v830_v12, %v816_v54  ;;  %v833_v56 = vadd.f32 %v831_v50, %v817_v4  ;;  %v942_v4 = vmul.f32 %v937_v41, %v932_v40  ;;  %v943_v12 = vmul.f32 %v941_v63, %v932_v40 }
 0x17b   :  { %v793_v40 = vmax.f32 %v2086_v13, 0.0 }
 0x17c   :  { %v852_v20 = vpop.permute.xlu1 %851  ;;  %v848_v23 = vadd.f32 %v846_v42, %v832_v17  ;;  %v849_v0 = vadd.f32 %v847_v3, %v833_v56 }
 0x17d   :  { %v862_v10 = vmul.f32 %v857_v49, %v852_v20  ;;  %v863_v39 = vmul.f32 %v861_v53, %v852_v20  ;;  %v985_v49 = vrot.slane %v2120_v58, %v1732_v32  ;;  %v989_v53 = vrot.slane %v2122_v36, %v1732_v32 }
 0x17f   :  { %v864_v9 = vadd.f32 %v862_v10, %v848_v23  ;;  %v865_v1 = vadd.f32 %v863_v39, %v849_v0  ;;  %v969_v23 = vrot.slane %v2120_v58, %v1722_v26  ;;  %v973_v0 = vrot.slane %v2122_v36, %v1722_v26 }
 0x181   :  { %v868_v59 = vpop.permute.xlu1 %867 }
 0x182   :  { %v878_v35 = vmul.f32 %v873_v43, %v868_v59  ;;  %v879_v25 = vmul.f32 %v877_v29, %v868_v59  ;;  %v980_v29 = vpop.permute.xlu0 %979 }
 0x183   :  { %v990_v59 = vmul.f32 %v985_v49, %v980_v29  ;;  %v991_v44 = vmul.f32 %v989_v53, %v980_v29 }
 0x184   :  { %v880_v48 = vadd.f32 %v878_v35, %v864_v9  ;;  %v881_v18 = vadd.f32 %v879_v25, %v865_v1  ;;  %v1001_v1 = vrot.slane %v2120_v58, %v1837_v21  ;;  %v1005_v35 = vrot.slane %v2122_v36, %v1837_v21 }
 0x186   :  { %v900_v24 = vpop.permute.xlu1 %899  ;;  %v896_v28 = vadd.f32 %v894_v62, %v880_v48  ;;  %v897_v22 = vadd.f32 %v895_v37, %v881_v18 }
 0x187   :  { %v910_v14 = vmul.f32 %v905_v33, %v900_v24  ;;  %v911_v5 = vmul.f32 %v909_v2, %v900_v24  ;;  %v1033_v33 = vrot.slane %v2120_v58, %v1874_v34  ;;  %v1037_v2 = vrot.slane %v2122_v36, %v1874_v34 }
 0x189   :  { %v912_v16 = vadd.f32 %v910_v14, %v896_v28  ;;  %v913_v11 = vadd.f32 %v911_v5, %v897_v22  ;;  %v1017_v28 = vrot.slane %v2120_v58, %v1909_v45  ;;  %v1021_v22 = vrot.slane %v2122_v36, %v1909_v45 }
 0x18b   :  { %v916_v46 = vpop.permute.xlu1 %915 }
 0x18c   :  { %v926_v8 = vmul.f32 %v921_v15, %v916_v46  ;;  %v927_v30 = vmul.f32 %v925_v60, %v916_v46  ;;  %v1028_v60 = vpop.permute.xlu0 %1027 }
 0x18d   :  { %v1038_v41 = vmul.f32 %v1033_v33, %v1028_v60  ;;  %v1039_v63 = vmul.f32 %v1037_v2, %v1028_v60 }
 0x18e   :  { %v928_v55 = vadd.f32 %v926_v8, %v912_v16  ;;  %v929_v54 = vadd.f32 %v927_v30, %v913_v11  ;;  %v1049_v11 = vrot.slane %v2120_v58, %v1998_v27  ;;  %v1053_v8 = vrot.slane %v2122_v36, %v1998_v27 }
 0x18f   :  { %v792_v30 = vmax.f32 %v2084_v61, 0.0 }
 0x190   :  { %v948_v50 = vpop.permute.xlu1 %947  ;;  %v944_v17 = vadd.f32 %v942_v4, %v928_v55  ;;  %v945_v56 = vadd.f32 %v943_v12, %v929_v54 }
 0x191   :  { %v958_v6 = vmul.f32 %v953_v47, %v948_v50  ;;  %v959_v20 = vmul.f32 %v957_v51, %v948_v50  ;;  %v1081_v58 = vrot.slane %v792_v30, %v1729_v31 }
 0x193   :  { %v960_v42 = vadd.f32 %v958_v6, %v944_v17  ;;  %v961_v3 = vadd.f32 %v959_v20, %v945_v56  ;;  %v1065_v17 = vrot.slane %v792_v30, %v2240_v38  ;;  %v1069_v56 = vrot.slane %v793_v40, %v2240_v38 }
 0x194   :  { %v1085_v6 = vrot.slane %v793_v40, %v1729_v31 }
 0x195   :  { %v964_v10 = vpop.permute.xlu1 %963 }
 0x196   :  { %v974_v39 = vmul.f32 %v969_v23, %v964_v10  ;;  %v975_v43 = vmul.f32 %v973_v0, %v964_v10  ;;  %v1097_v23 = vrot.slane %v792_v30, %v1722_v26  ;;  %v1101_v0 = vrot.slane %v793_v40, %v1722_v26 }
 0x198   :  { %v976_v7 = vadd.f32 %v974_v39, %v960_v42  ;;  %v977_v9 = vadd.f32 %v975_v43, %v961_v3  ;;  %v1076_v42 = vpop.permute.xlu0 %1075 }
 0x199   :  { %v1086_v49 = vmul.f32 %v1081_v58, %v1076_v42  ;;  %v1087_v53 = vmul.f32 %v1085_v6, %v1076_v42 }
 0x19a   :  { %v996_v25 = vpop.permute.xlu1 %995  ;;  %v992_v48 = vadd.f32 %v990_v59, %v976_v7  ;;  %v993_v18 = vadd.f32 %v991_v44, %v977_v9  ;;  %v1129_v9 = vrot.slane %v792_v30, %v1837_v21 }
 0x19b   :  { %v1006_v57 = vmul.f32 %v1001_v1, %v996_v25  ;;  %v1007_v24 = vmul.f32 %v1005_v35, %v996_v25  ;;  %v1133_v1 = vrot.slane %v793_v40, %v1837_v21  ;;  %v1113_v35 = vrot.slane %v792_v30, %v1732_v32 }
 0x19c   :  { %v1117_v25 = vrot.slane %v793_v40, %v1732_v32 }
 0x19d   :  { %v1008_v62 = vadd.f32 %v1006_v57, %v992_v48  ;;  %v1009_v37 = vadd.f32 %v1007_v24, %v993_v18  ;;  %v1124_v24 = vpop.permute.xlu0 %1123 }
 0x19f   :  { %v1012_v14 = vpop.permute.xlu1 %1011 }
 0x1a0   :  { %v1022_v5 = vmul.f32 %v1017_v28, %v1012_v14  ;;  %v1023_v15 = vmul.f32 %v1021_v22, %v1012_v14  ;;  %v1145_v28 = vrot.slane %v792_v30, %v1909_v45  ;;  %v1149_v22 = vrot.slane %v793_v40, %v1909_v45 }
 0x1a2   :  { %v1024_v46 = vadd.f32 %v1022_v5, %v1008_v62  ;;  %v1025_v16 = vadd.f32 %v1023_v15, %v1009_v37  ;;  %v1134_v62 = vmul.f32 %v1129_v9, %v1124_v24  ;;  %v1135_v37 = vmul.f32 %v1133_v1, %v1124_v24 }
 0x1a4   :  { %v1044_v55 = vpop.permute.xlu1 %1043  ;;  %v1040_v54 = vadd.f32 %v1038_v41, %v1024_v46  ;;  %v1041_v4 = vadd.f32 %v1039_v63, %v1025_v16  ;;  %v1177_v16 = vrot.slane %v792_v30, %v1998_v27 }
 0x1a5   :  { %v1054_v12 = vmul.f32 %v1049_v11, %v1044_v55  ;;  %v1055_v47 = vmul.f32 %v1053_v8, %v1044_v55  ;;  %v1181_v11 = vrot.slane %v793_v40, %v1998_v27  ;;  %v1161_v8 = vrot.slane %v792_v30, %v1874_v34 }
 0x1a6   :  { %v1165_v55 = vrot.slane %v793_v40, %v1874_v34 }
 0x1a7   :  { %v1056_v51 = vadd.f32 %v1054_v12, %v1040_v54  ;;  %v1057_v50 = vadd.f32 %v1055_v47, %v1041_v4  ;;  %v2183_v54 = vmax.f32 %v2092_v19, 0.0  ;;  %v2186_v4 = vmax.f32 %v2094_v52, 0.0 }
 0x1a9   :  { %v1060_v36 = vpop.permute.xlu1 %1059  ;;  %v1197_v30 = vrot.slane %v2186_v4, %v2240_v38  ;;  %v1277_v24 = vrot.slane %v2186_v4, %v1909_v45 }
 0x1aa   :  { %v1070_v20 = vmul.f32 %v1065_v17, %v1060_v36  ;;  %v1071_v61 = vmul.f32 %v1069_v56, %v1060_v36  ;;  %v1193_v36 = vrot.slane %v2183_v54, %v2240_v38 }
 0x1ac   :  { %v1072_v13 = vadd.f32 %v1070_v20, %v1056_v51  ;;  %v1073_v3 = vadd.f32 %v1071_v61, %v1057_v50  ;;  %v1172_v50 = vpop.permute.xlu0 %1171 }
 0x1ad   :  { %v1182_v17 = vmul.f32 %v1177_v16, %v1172_v50  ;;  %v1183_v56 = vmul.f32 %v1181_v11, %v1172_v50 }
 0x1ae   :  { %v1092_v10 = vpop.permute.xlu1 %1091  ;;  %v1088_v39 = vadd.f32 %v1086_v49, %v1072_v13  ;;  %v1089_v43 = vadd.f32 %v1087_v53, %v1073_v3  ;;  %v1225_v3 = vrot.slane %v2183_v54, %v1722_v26  ;;  %v1229_v49 = vrot.slane %v2186_v4, %v1722_v26 }
 0x1af   :  { %v1102_v29 = vmul.f32 %v1097_v23, %v1092_v10  ;;  %v1103_v59 = vmul.f32 %v1101_v0, %v1092_v10  ;;  %v1209_v53 = vrot.slane %v2183_v54, %v1729_v31  ;;  %v1213_v23 = vrot.slane %v2186_v4, %v1729_v31 }
 0x1b0   :  { %v1245_v26 = vrot.slane %v2186_v4, %v1732_v32 }
 0x1b1   :  { %v1104_v44 = vadd.f32 %v1102_v29, %v1088_v39  ;;  %v1105_v7 = vadd.f32 %v1103_v59, %v1089_v43  ;;  %v1220_v39 = vpop.permute.xlu0 %1219 }
 0x1b2   :  { %v1230_v43 = vmul.f32 %v1225_v3, %v1220_v39  ;;  %v1231_v29 = vmul.f32 %v1229_v49, %v1220_v39 }
 0x1b3   :  { %v1108_v48 = vpop.permute.xlu1 %1107 }
 0x1b4   :  { %v1118_v18 = vmul.f32 %v1113_v35, %v1108_v48  ;;  %v1119_v57 = vmul.f32 %v1117_v25, %v1108_v48 }
 0x1b6   :  { %v1120_v33 = vadd.f32 %v1118_v18, %v1104_v44  ;;  %v1121_v2 = vadd.f32 %v1119_v57, %v1105_v7  ;;  %v1241_v7 = vrot.slane %v2183_v54, %v1732_v32  ;;  %v1273_v57 = vrot.slane %v2183_v54, %v1909_v45  ;;  %v1268_v32 = vpop.permute.xlu0 %1267 }
 0x1b7   :  { %v1293_v45 = vrot.slane %v2186_v4, %v1874_v34 }
 0x1b8   :  { %v1140_v14 = vpop.permute.xlu1 %1139  ;;  %v1136_v5 = vadd.f32 %v1134_v62, %v1120_v33  ;;  %v1137_v15 = vadd.f32 %v1135_v37, %v1121_v2  ;;  %v1257_v62 = vrot.slane %v2183_v54, %v1837_v21  ;;  %v1261_v37 = vrot.slane %v2186_v4, %v1837_v21 }
 0x1b9   :  { %v1150_v60 = vmul.f32 %v1145_v28, %v1140_v14  ;;  %v1151_v41 = vmul.f32 %v1149_v22, %v1140_v14  ;;  %v1278_v22 = vmul.f32 %v1273_v57, %v1268_v32  ;;  %v1279_v14 = vmul.f32 %v1277_v24, %v1268_v32 }
 0x1bb   :  { %v1152_v63 = vadd.f32 %v1150_v60, %v1136_v5  ;;  %v1153_v46 = vadd.f32 %v1151_v41, %v1137_v15  ;;  %v1289_v60 = vrot.slane %v2183_v54, %v1874_v34 }
 0x1bd   :  { %v1156_v12 = vpop.permute.xlu1 %1155 }
 0x1be   :  { %v1166_v47 = vmul.f32 %v1161_v8, %v1156_v12  ;;  %v1167_v51 = vmul.f32 %v1165_v55, %v1156_v12  ;;  %v1305_v55 = vrot.slane %v2183_v54, %v1998_v27  ;;  %v1309_v12 = vrot.slane %v2186_v4, %v1998_v27 }
 0x1c0   :  { %v1168_v58 = vadd.f32 %v1166_v47, %v1152_v63  ;;  %v1169_v6 = vadd.f32 %v1167_v51, %v1153_v46 }
 0x1c2   :  { %v1188_v40 = vpop.permute.xlu1 %1187  ;;  %v1184_v19 = vadd.f32 %v1182_v17, %v1168_v58  ;;  %v1185_v20 = vadd.f32 %v1183_v56, %v1169_v6 }
 0x1c3   :  { %v1198_v61 = vmul.f32 %v1193_v36, %v1188_v40  ;;  %v1199_v52 = vmul.f32 %v1197_v30, %v1188_v40 }
 0x1c5   :  { %v1200_v42 = vadd.f32 %v1198_v61, %v1184_v19  ;;  %v1201_v13 = vadd.f32 %v1199_v52, %v1185_v20 }
 0x1c7   :  { %v1204_v38 = vpop.permute.xlu1 %1203 }
 0x1c8   :  { %v1214_v0 = vmul.f32 %v1209_v53, %v1204_v38  ;;  %v1215_v10 = vmul.f32 %v1213_v23, %v1204_v38 }
 0x1ca   :  { %v1216_v59 = vadd.f32 %v1214_v0, %v1200_v42  ;;  %v1217_v44 = vadd.f32 %v1215_v10, %v1201_v13 }
 0x1cc   :  { %v1236_v9 = vpop.permute.xlu1 %1235  ;;  %v1232_v1 = vadd.f32 %v1230_v43, %v1216_v59  ;;  %v1233_v35 = vadd.f32 %v1231_v29, %v1217_v44 }
 0x1cd   :  { %v1246_v25 = vmul.f32 %v1241_v7, %v1236_v9  ;;  %v1247_v48 = vmul.f32 %v1245_v26, %v1236_v9 }
 0x1cf   :  { %v1248_v31 = vadd.f32 %v1246_v25, %v1232_v1  ;;  %v1249_v18 = vadd.f32 %v1247_v48, %v1233_v35 }
 0x1d1   :  { %v1252_v33 = vpop.permute.xlu1 %1251 }
 0x1d2   :  { %v1262_v2 = vmul.f32 %v1257_v62, %v1252_v33  ;;  %v1263_v28 = vmul.f32 %v1261_v37, %v1252_v33 }
 0x1d4   :  { %v1264_v5 = vadd.f32 %v1262_v2, %v1248_v31  ;;  %v1265_v15 = vadd.f32 %v1263_v28, %v1249_v18 }
 0x1d6   :  { %v1284_v41 = vpop.permute.xlu1 %1283  ;;  %v1280_v63 = vadd.f32 %v1278_v22, %v1264_v5  ;;  %v1281_v46 = vadd.f32 %v1279_v14, %v1265_v15 }
 0x1d7   :  { %v1294_v16 = vmul.f32 %v1289_v60, %v1284_v41  ;;  %v1295_v11 = vmul.f32 %v1293_v45, %v1284_v41 }
 0x1d9   :  { %v1296_v21 = vadd.f32 %v1294_v16, %v1280_v63  ;;  %v1297_v8 = vadd.f32 %v1295_v11, %v1281_v46 }
 0x1db   :  { %v1300_v47 = vpop.permute.xlu1 %1299 }
 0x1dc   :  { %v1310_v51 = vmul.f32 %v1305_v55, %v1300_v47  ;;  %v1311_v50 = vmul.f32 %v1309_v12, %v1300_v47 }
 0x1de   :  { %v1312_v17 = vadd.f32 %v1310_v51, %v1296_v21  ;;  %v1313_v34 = vadd.f32 %v1311_v50, %v1297_v8 }
 0x1e0   :  { %v1316_v56 = vcombine.low %v1312_v17, %v1313_v34 }
 0x1e2   :  { %1342 = vst.sshfl [vmem:[#allocation7] sm:$0x33 pattern:$0x76325410] %v1316_v56 }
 0x1e3   :  { %1528 = shalt.err (!%p1525_p6)
}
 0x1e4   :  { %s1529_s10 = scalar_lea.hbm %s2234_s2, 64 }
 0x1e5   :  { %p1530_p7 = scmp.ne.s32.totalorder %s2234_s2, %s1529_s10  ;;  %p1533_p8 = scmp.lt.u32.totalorder %s1529_s10, %s2234_s2 }
 0x1e7   :  { %p1535_p9 = pnand %p1533_p8, %p1530_p7 }
 0x1e9   :  { %1538 = shalt.err (!%p1535_p9)
}
 0x1ea   :  { %1335 = dma.vmem_to_hbm [thread:$0]  %s1333_s6, 64, %s2234_s2, [#allocation4]  }
 0x1eb   :  { %1543 = dma.done.wait [#allocation4], 64  }
 0x1ec   :  { %1544 = vsyncadd [#allocation4], 4294967232 }
 0x1ed   :  { %1339 = vsyncpa [#allocation3], 1 }
 0x1ee   :  { %1340 = vsyncpa [#allocation6], 1 }
 0x1ef   :  { %1341 = vsyncpa [#allocation4], 1 }

</bundles_post_ra>
